<compile_context>
chip_gen: v7x
topology: tpu7x:2x2x1
jax: 0.10.0
libtpu: 0.0.40
codegen_flags: <defaults>
</compile_context>

<pallas_src>
import functools

import jax
import jax.numpy as jnp
from jax.experimental import pallas as pl
from jax.experimental.pallas import tpu as pltpu

EPS = 1e-5   # torch BatchNorm1d default eps
LANE = 128   # TPU lane width


def _round_up(v, m):
    return (v + m - 1) // m * m


def _pad2(a, rows, cols):
    return jnp.pad(a, ((0, rows - a.shape[0]), (0, cols - a.shape[1])))


# ---------------------------------------------------------------------------
# Fused kernel: whole ResGCN forward (eval mode, BN pre-folded into weights).
# Everything resident in VMEM; runs once (no grid).
# ---------------------------------------------------------------------------
def _fused_resgcn_kernel(x_ref, adj_ref, w1_ref, b1_ref, w2_ref, b2_ref,
                         wm1_ref, bm1_ref, wm2_ref, bm2_ref, wo_ref, bo_ref,
                         o_ref):
    adj = adj_ref[...]            # (N_pad, N_pad) bf16; padded rows/cols are 0
    x = x_ref[...]                # (N_pad, F_pad)  bf16

    # GCN layer 1: relu(adj @ (x @ W1') + b1')          (bn1 folded into W1'/b1')
    xw = jnp.dot(x, w1_ref[...], preferred_element_type=jnp.float32)
    h = jnp.dot(adj, xw.astype(jnp.bfloat16),
                preferred_element_type=jnp.float32) + b1_ref[...]
    x1 = jnp.maximum(h, 0.0).astype(jnp.bfloat16)

    # GCN layer 2: relu(adj @ (x1 @ W2') + b2')         (bn1 reused -> folded)
    xw = jnp.dot(x1, w2_ref[...], preferred_element_type=jnp.float32)
    h = jnp.dot(adj, xw.astype(jnp.bfloat16),
                preferred_element_type=jnp.float32) + b2_ref[...]
    x2 = jnp.maximum(h, 0.0).astype(jnp.bfloat16)

    # MLP head: Lin->BN->ReLU, Lin->BN->ReLU, Lin        (BNs folded)
    h = jnp.dot(x2, wm1_ref[...], preferred_element_type=jnp.float32) + bm1_ref[...]
    h = jnp.maximum(h, 0.0).astype(jnp.bfloat16)
    h = jnp.dot(h, wm2_ref[...], preferred_element_type=jnp.float32) + bm2_ref[...]
    h = jnp.maximum(h, 0.0).astype(jnp.bfloat16)

    # Final Linear + log_softmax.  Padded class lanes already carry -1e30
    # (baked into bo in the wrapper), so max / logsumexp ignore them.
    logits = jnp.dot(h, wo_ref[...], preferred_element_type=jnp.float32) + bo_ref[...]
    m = jnp.max(logits, axis=1, keepdims=True)
    s = logits - m
    lse = jnp.log(jnp.sum(jnp.exp(s), axis=1, keepdims=True))
    o_ref[...] = (s - lse).astype(o_ref.dtype)


# ---------------------------------------------------------------------------
# Parameters (deterministic, in-script) + eval-mode BN folding / padding
# ---------------------------------------------------------------------------
def init_params(key, nfeat, nhid, nclass):
    ks = jax.random.split(key, 8)

    def lin(k, fan_in, fan_out):
        kw, kb = jax.random.split(k)
        scale = 1.0 / jnp.sqrt(fan_in)
        w = jax.random.uniform(kw, (fan_in, fan_out), jnp.float32, -scale, scale)
        b = jax.random.uniform(kb, (1, fan_out), jnp.float32, -scale, scale)
        return w, b

    def bn(dim):
        # gamma=1, beta=0, running_mean=0, running_var=1 (fresh BatchNorm state)
        return (jnp.ones((1, dim), jnp.float32), jnp.zeros((1, dim), jnp.float32),
                jnp.zeros((1, dim), jnp.float32), jnp.ones((1, dim), jnp.float32))

    params = {}
    params["gc1_w"], params["gc1_b"] = lin(ks[0], nfeat, nhid)
    params["gc2_w"], params["gc2_b"] = lin(ks[1], nhid, nhid)
    params["bn1"] = bn(nhid)
    params["mlp1_w"], params["mlp1_b"] = lin(ks[2], nhid, 128)
    params["mlp1_bn"] = bn(128)
    params["mlp2_w"], params["mlp2_b"] = lin(ks[3], 128, 64)
    params["mlp2_bn"] = bn(64)
    params["out_w"], params["out_b"] = lin(ks[4], 64, nclass)
    return params


def prepare_params(params, nfeat, nhid, nclass):
    """Fold eval-mode BN into weights, pad to lane-aligned shapes, cast to bf16."""
    f_pad = _round_up(nfeat, LANE)
    h_pad = _round_up(nhid, LANE)
    m1_pad = _round_up(128, LANE)
    m2_pad = _round_up(64, LANE)
    c_pad = _round_up(nclass, LANE)

    def fold(w, b, bn):
        if bn is not None:
            gamma, beta, mean, var = bn
            scale = gamma / jnp.sqrt(var + EPS)        # (1, out)
            w = w * scale
            b = (b - mean) * scale + beta
        return w, b

    def pad_cast(w, b, in_pad, out_pad):
        # zero padding: padded feature lanes stay exactly 0 through every layer
        return (_pad2(w, in_pad, out_pad).astype(jnp.bfloat16),
                _pad2(b, 1, out_pad).astype(jnp.float32))

    p = {}
    w, b = fold(params["gc1_w"], params["gc1_b"], params["bn1"])
    p["gc1_w"], p["gc1_b"] = pad_cast(w, b, f_pad, h_pad)
    w, b = fold(params["gc2_w"], params["gc2_b"], params["bn1"])
    p["gc2_w"], p["gc2_b"] = pad_cast(w, b, h_pad, h_pad)
    w, b = fold(params["mlp1_w"], params["mlp1_b"], params["mlp1_bn"])
    p["mlp1_w"], p["mlp1_b"] = pad_cast(w, b, h_pad, m1_pad)
    w, b = fold(params["mlp2_w"], params["mlp2_b"], params["mlp2_bn"])
    p["mlp2_w"], p["mlp2_b"] = pad_cast(w, b, m1_pad, m2_pad)
    w, b = fold(params["out_w"], params["out_b"], None)
    wo, bo = pad_cast(w, b, m2_pad, c_pad)
    # Bake -1e30 into the padded class lanes of the output bias so the
    # in-kernel log-softmax ignores them (no per-call iota/where).
    col = jnp.arange(c_pad)[None, :]
    bo = jnp.where(col < nclass, bo, jnp.float32(-1e30))
    p["out_w"], p["out_b"] = wo, bo
    return p


# ---------------------------------------------------------------------------
# Forward pass (eval mode) — single fused pallas_call
# ---------------------------------------------------------------------------
def resgcn_forward(prepared, x, adj, *, nclass):
    n, nfeat = x.shape
    n_pad = _round_up(n, LANE)          # adj columns map to lanes -> keep 128-aligned
    f_pad = _round_up(nfeat, LANE)

    x_p = _pad2(x, n_pad, f_pad).astype(jnp.bfloat16)
    adj_p = _pad2(adj, n_pad, n_pad).astype(jnp.bfloat16)

    c_pad = prepared["out_b"].shape[1]
    vmem_spec = lambda: pl.BlockSpec(memory_space=pltpu.MemorySpace.VMEM)

    out_p = pl.pallas_call(
        _fused_resgcn_kernel,
        out_shape=jax.ShapeDtypeStruct((n_pad, c_pad), jnp.float32),
        in_specs=[vmem_spec() for _ in range(12)],
        out_specs=vmem_spec(),
    )(x_p, adj_p,
      prepared["gc1_w"], prepared["gc1_b"],
      prepared["gc2_w"], prepared["gc2_b"],
      prepared["mlp1_w"], prepared["mlp1_b"],
      prepared["mlp2_w"], prepared["mlp2_b"],
      prepared["out_w"], prepared["out_b"])
    return out_p[:n, :nclass]


# Pure-JAX f32 reference (un-folded BN), for correctness checking.
def resgcn_reference(params, x, adj):
    def bn_apply(h, bn):
        g, be, m, v = bn
        return (h - m) * g / jnp.sqrt(v + EPS) + be

    h1 = jnp.maximum(bn_apply(adj @ (x @ params["gc1_w"]) + params["gc1_b"],
                              params["bn1"]), 0.0)
    h2 = jnp.maximum(bn_apply(adj @ (h1 @ params["gc2_w"]) + params["gc2_b"],
                              params["bn1"]), 0.0)
    h = jnp.maximum(bn_apply(h2 @ params["mlp1_w"] + params["mlp1_b"],
                             params["mlp1_bn"]), 0.0)
    h = jnp.maximum(bn_apply(h @ params["mlp2_w"] + params["mlp2_b"],
                             params["mlp2_bn"]), 0.0)
    logits = h @ params["out_w"] + params["out_b"]
    return jax.nn.log_softmax(logits, axis=1)


if __name__ == "__main__":
    N, nfeat, nhid, nclass = 256, 16, 32, 4

    key = jax.random.PRNGKey(0)
    kx, kadj, kp = jax.random.split(key, 3)

    x = jax.random.normal(kx, (N, nfeat), jnp.float32)
    # dense row-normalized "adjacency", as in a standard GCN setup
    a = jnp.abs(jax.random.normal(kadj, (N, N), jnp.float32)) + jnp.eye(N)
    adj = a / jnp.sum(a, axis=1, keepdims=True)

    params = init_params(kp, nfeat, nhid, nclass)
    prepared = prepare_params(params, nfeat, nhid, nclass)

    fwd = jax.jit(functools.partial(resgcn_forward, nclass=nclass))
    out = fwd(prepared, x, adj)
    jax.block_until_ready(out)

    assert out.shape == (N, nclass)
    # rows of log_softmax must exp-sum to 1
    assert bool(jnp.allclose(jnp.sum(jnp.exp(out), axis=1), 1.0, atol=1e-3))
    # check against pure-JAX f32 reference (bf16 MXU inputs -> loose tolerance)
    ref = resgcn_reference(params, x, adj)
    assert bool(jnp.allclose(out, ref, atol=5e-2)), float(jnp.max(jnp.abs(out - ref)))
    print("KERNEL_OK")
</pallas_src>

<mosaic_0001>
module attributes {stable_mosaic.version = 11 : i64} {
  func.func @_fused_resgcn_kernel(%arg0: memref<256x128xbf16, #tpu.memory_space<vmem>>, %arg1: memref<256x256xbf16, #tpu.memory_space<vmem>>, %arg2: memref<128x128xbf16, #tpu.memory_space<vmem>>, %arg3: memref<1x128xf32, #tpu.memory_space<vmem>>, %arg4: memref<128x128xbf16, #tpu.memory_space<vmem>>, %arg5: memref<1x128xf32, #tpu.memory_space<vmem>>, %arg6: memref<128x128xbf16, #tpu.memory_space<vmem>>, %arg7: memref<1x128xf32, #tpu.memory_space<vmem>>, %arg8: memref<128x128xbf16, #tpu.memory_space<vmem>>, %arg9: memref<1x128xf32, #tpu.memory_space<vmem>>, %arg10: memref<128x128xbf16, #tpu.memory_space<vmem>>, %arg11: memref<1x128xf32, #tpu.memory_space<vmem>>, %arg12: memref<256x128xf32, #tpu.memory_space<vmem>>) attributes {dimension_semantics = [], scalar_prefetch = 0 : i64, scratch_operands = 0 : i64, tpu.core_type = #tpu.core_type<tc>} {
    %c0 = arith.constant 0 : index
    %c0_0 = arith.constant 0 : index
    %0 = vector.load %arg1[%c0, %c0_0] : memref<256x256xbf16, #tpu.memory_space<vmem>>, vector<256x256xbf16>
    %c0_1 = arith.constant 0 : index
    %c0_2 = arith.constant 0 : index
    %1 = vector.load %arg0[%c0_1, %c0_2] : memref<256x128xbf16, #tpu.memory_space<vmem>>, vector<256x128xbf16>
    %c0_3 = arith.constant 0 : index
    %c0_4 = arith.constant 0 : index
    %2 = vector.load %arg2[%c0_3, %c0_4] : memref<128x128xbf16, #tpu.memory_space<vmem>>, vector<128x128xbf16>
    %cst = arith.constant dense<0.000000e+00> : vector<256x128xf32>
    %3 = tpu.matmul %1, %2, %cst {dimension_numbers = #tpu.dot_dimension_numbers<[1], [0], [0], [1], [0, 0, 1, 1], [], []>} : vector<256x128xbf16>, vector<128x128xbf16>, vector<256x128xf32> -> vector<256x128xf32>
    %4 = arith.truncf %3 : vector<256x128xf32> to vector<256x128xbf16>
    %cst_5 = arith.constant dense<0.000000e+00> : vector<256x128xf32>
    %5 = tpu.matmul %0, %4, %cst_5 {dimension_numbers = #tpu.dot_dimension_numbers<[1], [0], [0], [1], [0, 0, 1, 1], [], []>} : vector<256x256xbf16>, vector<256x128xbf16>, vector<256x128xf32> -> vector<256x128xf32>
    %c0_6 = arith.constant 0 : index
    %c0_7 = arith.constant 0 : index
    %6 = vector.load %arg3[%c0_6, %c0_7] : memref<1x128xf32, #tpu.memory_space<vmem>>, vector<1x128xf32>
    %7 = vector.broadcast %6 : vector<1x128xf32> to vector<256x128xf32>
    %8 = arith.addf %5, %7 : vector<256x128xf32>
    %cst_8 = arith.constant 0.000000e+00 : f32
    %9 = vector.broadcast %cst_8 : f32 to vector<256x128xf32>
    %10 = arith.maximumf %8, %9 : vector<256x128xf32>
    %11 = arith.truncf %10 : vector<256x128xf32> to vector<256x128xbf16>
    %c0_9 = arith.constant 0 : index
    %c0_10 = arith.constant 0 : index
    %12 = vector.load %arg4[%c0_9, %c0_10] : memref<128x128xbf16, #tpu.memory_space<vmem>>, vector<128x128xbf16>
    %cst_11 = arith.constant dense<0.000000e+00> : vector<256x128xf32>
    %13 = tpu.matmul %11, %12, %cst_11 {dimension_numbers = #tpu.dot_dimension_numbers<[1], [0], [0], [1], [0, 0, 1, 1], [], []>} : vector<256x128xbf16>, vector<128x128xbf16>, vector<256x128xf32> -> vector<256x128xf32>
    %14 = arith.truncf %13 : vector<256x128xf32> to vector<256x128xbf16>
    %cst_12 = arith.constant dense<0.000000e+00> : vector<256x128xf32>
    %15 = tpu.matmul %0, %14, %cst_12 {dimension_numbers = #tpu.dot_dimension_numbers<[1], [0], [0], [1], [0, 0, 1, 1], [], []>} : vector<256x256xbf16>, vector<256x128xbf16>, vector<256x128xf32> -> vector<256x128xf32>
    %c0_13 = arith.constant 0 : index
    %c0_14 = arith.constant 0 : index
    %16 = vector.load %arg5[%c0_13, %c0_14] : memref<1x128xf32, #tpu.memory_space<vmem>>, vector<1x128xf32>
    %17 = vector.broadcast %16 : vector<1x128xf32> to vector<256x128xf32>
    %18 = arith.addf %15, %17 : vector<256x128xf32>
    %cst_15 = arith.constant 0.000000e+00 : f32
    %19 = vector.broadcast %cst_15 : f32 to vector<256x128xf32>
    %20 = arith.maximumf %18, %19 : vector<256x128xf32>
    %21 = arith.truncf %20 : vector<256x128xf32> to vector<256x128xbf16>
    %c0_16 = arith.constant 0 : index
    %c0_17 = arith.constant 0 : index
    %22 = vector.load %arg6[%c0_16, %c0_17] : memref<128x128xbf16, #tpu.memory_space<vmem>>, vector<128x128xbf16>
    %cst_18 = arith.constant dense<0.000000e+00> : vector<256x128xf32>
    %23 = tpu.matmul %21, %22, %cst_18 {dimension_numbers = #tpu.dot_dimension_numbers<[1], [0], [0], [1], [0, 0, 1, 1], [], []>} : vector<256x128xbf16>, vector<128x128xbf16>, vector<256x128xf32> -> vector<256x128xf32>
    %c0_19 = arith.constant 0 : index
    %c0_20 = arith.constant 0 : index
    %24 = vector.load %arg7[%c0_19, %c0_20] : memref<1x128xf32, #tpu.memory_space<vmem>>, vector<1x128xf32>
    %25 = vector.broadcast %24 : vector<1x128xf32> to vector<256x128xf32>
    %26 = arith.addf %23, %25 : vector<256x128xf32>
    %cst_21 = arith.constant 0.000000e+00 : f32
    %27 = vector.broadcast %cst_21 : f32 to vector<256x128xf32>
    %28 = arith.maximumf %26, %27 : vector<256x128xf32>
    %29 = arith.truncf %28 : vector<256x128xf32> to vector<256x128xbf16>
    %c0_22 = arith.constant 0 : index
    %c0_23 = arith.constant 0 : index
    %30 = vector.load %arg8[%c0_22, %c0_23] : memref<128x128xbf16, #tpu.memory_space<vmem>>, vector<128x128xbf16>
    %cst_24 = arith.constant dense<0.000000e+00> : vector<256x128xf32>
    %31 = tpu.matmul %29, %30, %cst_24 {dimension_numbers = #tpu.dot_dimension_numbers<[1], [0], [0], [1], [0, 0, 1, 1], [], []>} : vector<256x128xbf16>, vector<128x128xbf16>, vector<256x128xf32> -> vector<256x128xf32>
    %c0_25 = arith.constant 0 : index
    %c0_26 = arith.constant 0 : index
    %32 = vector.load %arg9[%c0_25, %c0_26] : memref<1x128xf32, #tpu.memory_space<vmem>>, vector<1x128xf32>
    %33 = vector.broadcast %32 : vector<1x128xf32> to vector<256x128xf32>
    %34 = arith.addf %31, %33 : vector<256x128xf32>
    %cst_27 = arith.constant 0.000000e+00 : f32
    %35 = vector.broadcast %cst_27 : f32 to vector<256x128xf32>
    %36 = arith.maximumf %34, %35 : vector<256x128xf32>
    %37 = arith.truncf %36 : vector<256x128xf32> to vector<256x128xbf16>
    %c0_28 = arith.constant 0 : index
    %c0_29 = arith.constant 0 : index
    %38 = vector.load %arg10[%c0_28, %c0_29] : memref<128x128xbf16, #tpu.memory_space<vmem>>, vector<128x128xbf16>
    %cst_30 = arith.constant dense<0.000000e+00> : vector<256x128xf32>
    %39 = tpu.matmul %37, %38, %cst_30 {dimension_numbers = #tpu.dot_dimension_numbers<[1], [0], [0], [1], [0, 0, 1, 1], [], []>} : vector<256x128xbf16>, vector<128x128xbf16>, vector<256x128xf32> -> vector<256x128xf32>
    %c0_31 = arith.constant 0 : index
    %c0_32 = arith.constant 0 : index
    %40 = vector.load %arg11[%c0_31, %c0_32] : memref<1x128xf32, #tpu.memory_space<vmem>>, vector<1x128xf32>
    %41 = vector.broadcast %40 : vector<1x128xf32> to vector<256x128xf32>
    %42 = arith.addf %39, %41 : vector<256x128xf32>
    %cst_33 = arith.constant dense<0xFF800000> : vector<256xf32>
    %43 = vector.multi_reduction <maximumf>, %42, %cst_33 [1] : vector<256x128xf32> to vector<256xf32>
    %44 = vector.shape_cast %43 : vector<256xf32> to vector<256x1xf32>
    %45 = vector.broadcast %44 : vector<256x1xf32> to vector<256x128xf32>
    %46 = arith.subf %42, %45 : vector<256x128xf32>
    %47 = math.exp %46 : vector<256x128xf32>
    %cst_34 = arith.constant dense<0.000000e+00> : vector<256xf32>
    %48 = vector.multi_reduction <add>, %47, %cst_34 [1] : vector<256x128xf32> to vector<256xf32>
    %49 = vector.shape_cast %48 : vector<256xf32> to vector<256x1xf32>
    %50 = math.log %49 : vector<256x1xf32>
    %51 = vector.broadcast %50 : vector<256x1xf32> to vector<256x128xf32>
    %52 = arith.subf %46, %51 : vector<256x128xf32>
    %c0_35 = arith.constant 0 : index
    %c0_36 = arith.constant 0 : index
    %53 = vector.load %arg12[%c0_35, %c0_36] : memref<256x128xf32, #tpu.memory_space<vmem>>, vector<256x128xf32>
    tpu.vector_store %arg12[%c0_35, %c0_36], %52 {strides = array<i32>} : memref<256x128xf32, #tpu.memory_space<vmem>>, vector<256x128xf32>,
    return
  }
}

</mosaic_0001>

<bundles_post_ra>
// kernel: resgcn_forward.1
= control target key start
LH: loop header
LB: loop body
LE: loop exit
PB: predicated region body
PF: predicated region fallthrough
CT: control target
= control target key end

     0   :  { %s4343_s2 = inlined_call_operand.vmem [shape: bf16[128,128], index: 2, kind: input, shape index: {}]   ;;  %s4344_s0 = inlined_call_operand.vmem [shape: bf16[256,128], index: 0, kind: input, shape index: {}]   ;;  %s4345_s1 = inlined_call_operand.vmem [shape: bf16[256,256], index: 1, kind: input, shape index: {}]   ;;  %s4346_s4 = inlined_call_operand.vmem [shape: bf16[128,128], index: 4, kind: input, shape index: {}]   ;;  %s4347_s3 = inlined_call_operand.vmem [shape: f32[1,128], index: 3, kind: input, shape index: {}]   ;;  %s4348_s6 = inlined_call_operand.vmem [shape: bf16[128,128], index: 6, kind: input, shape index: {}]   ;;  %s4349_s5 = inlined_call_operand.vmem [shape: f32[1,128], index: 5, kind: input, shape index: {}]   ;;  %s4350_s8 = inlined_call_operand.vmem [shape: bf16[128,128], index: 8, kind: input, shape index: {}]   ;;  %s4351_s7 = inlined_call_operand.vmem [shape: f32[1,128], index: 7, kind: input, shape index: {}]   ;;  %s4352_s10 = inlined_call_operand.vmem [shape: bf16[128,128], index: 10, kind: input, shape index: {}]   ;;  %s4353_s9 = inlined_call_operand.vmem [shape: f32[1,128], index: 9, kind: input, shape index: {}]   ;;  %s4354_s11 = inlined_call_operand.vmem [shape: f32[1,128], index: 11, kind: input, shape index: {}]   ;;  %s4355_s12 = inlined_call_operand.vmem [shape: f32[256,128], index: 12, kind: output, shape index: {}]  }
   0x1   :  { %v3117_v0 = vld [vmem:[%s4343_s2] sm:$0xff]   ;;  %v3118_v1 = vld [vmem:[%s4343_s2 + $0x8] sm:$0xff]   ;;  %v3119_v2 = vld [vmem:[%s4343_s2 + $0x10] sm:$0xff]  }
   0x2   :  { %2861 = vmatprep.subr.bf16.mxu0 %v3117_v0  ;;  %3101 = vmatprep.subr.bf16.mxu1 %v3117_v0  ;;  %v3120_v3 = vld [vmem:[%s4343_s2 + $0x18] sm:$0xff]   ;;  %v3125_v4 = vld [vmem:[%s4344_s0] sm:$0xff]   ;;  %v3122_v7 = vld [vmem:[%s4343_s2 + $0x28] sm:$0xff]  }
   0x3   :  { %2862 = vmatpush3.bf16.msra.mxu0 %v3117_v0  ;;  %3109 = vmatpush3.bf16.msra.mxu1 %v3117_v0  ;;  %v3126_v5 = vld [vmem:[%s4344_s0 + $0x40] sm:$0xff]   ;;  %v3123_v8 = vld [vmem:[%s4343_s2 + $0x30] sm:$0xff]   ;;  %v3124_v9 = vld [vmem:[%s4343_s2 + $0x38] sm:$0xff]  }
   0x4   :  { %2863 = vmatprep.subr.bf16.mxu0 %v3118_v1  ;;  %3102 = vmatprep.subr.bf16.mxu1 %v3118_v1  ;;  %v3121_v6 = vld [vmem:[%s4343_s2 + $0x20] sm:$0xff]   ;;  %v3127_v10 = vld [vmem:[%s4344_s0 + $0x8] sm:$0xff]   ;;  %v3129_v12 = vld [vmem:[%s4344_s0 + $0x10] sm:$0xff]  }
   0x5   :  { %2877 = vmatprep.mubr.bf16.mxu0 %v3125_v4  ;;  %2893 = vmatprep.mubr.bf16.mxu1 %v3126_v5  ;;  %v3128_v11 = vld [vmem:[%s4344_s0 + $0x48] sm:$0xff]   ;;  %v3130_v13 = vld [vmem:[%s4344_s0 + $0x50] sm:$0xff]   ;;  %v3131_v14 = vld [vmem:[%s4344_s0 + $0x18] sm:$0xff]  }
   0x6   :  { %v3132_v15 = vld [vmem:[%s4344_s0 + $0x58] sm:$0xff]   ;;  %v3133_v16 = vld [vmem:[%s4344_s0 + $0x20] sm:$0xff]   ;;  %v3135_v18 = vld [vmem:[%s4344_s0 + $0x28] sm:$0xff]  }
   0x7   :  { %2864 = vmatpush3.bf16.msra.mxu0 %v3118_v1  ;;  %3110 = vmatpush3.bf16.msra.mxu1 %v3118_v1  ;;  %v3134_v17 = vld [vmem:[%s4344_s0 + $0x60] sm:$0xff]   ;;  %v3136_v19 = vld [vmem:[%s4344_s0 + $0x68] sm:$0xff]   ;;  %v3137_v20 = vld [vmem:[%s4344_s0 + $0x30] sm:$0xff]  }
   0x8   :  { %2865 = vmatprep.subr.bf16.mxu0 %v3119_v2  ;;  %3103 = vmatprep.subr.bf16.mxu1 %v3119_v2  ;;  %v3138_v21 = vld [vmem:[%s4344_s0 + $0x70] sm:$0xff]   ;;  %v3139_v22 = vld [vmem:[%s4344_s0 + $0x38] sm:$0xff]   ;;  %v3489_v24 = vld [vmem:[%s4345_s1 + $0x4] ss:$8 sps:$4 sm:$0xff]  }
   0x9   :  { %v3140_v23 = vld [vmem:[%s4344_s0 + $0x78] sm:$0xff]  }
   0xb   :  { %2866 = vmatpush3.bf16.msra.mxu0 %v3119_v2  ;;  %3111 = vmatpush3.bf16.msra.mxu1 %v3119_v2 }
   0xc   :  { %2867 = vmatprep.subr.bf16.mxu0 %v3120_v3  ;;  %3104 = vmatprep.subr.bf16.mxu1 %v3120_v3 }
   0xf   :  { %2868 = vmatpush3.bf16.msra.mxu0 %v3120_v3  ;;  %3112 = vmatpush3.bf16.msra.mxu1 %v3120_v3 }
  0x10   :  { %2869 = vmatprep.subr.bf16.mxu0 %v3121_v6  ;;  %3105 = vmatprep.subr.bf16.mxu1 %v3121_v6 }
  0x13   :  { %2870 = vmatpush3.bf16.msra.mxu0 %v3121_v6  ;;  %3113 = vmatpush3.bf16.msra.mxu1 %v3121_v6 }
  0x14   :  { %2871 = vmatprep.subr.bf16.mxu0 %v3122_v7  ;;  %3106 = vmatprep.subr.bf16.mxu1 %v3122_v7 }
  0x17   :  { %2872 = vmatpush3.bf16.msra.mxu0 %v3122_v7  ;;  %3114 = vmatpush3.bf16.msra.mxu1 %v3122_v7 }
  0x18   :  { %2873 = vmatprep.subr.bf16.mxu0 %v3123_v8  ;;  %3107 = vmatprep.subr.bf16.mxu1 %v3123_v8 }
  0x1b   :  { %2874 = vmatpush3.bf16.msra.mxu0 %v3123_v8  ;;  %3115 = vmatpush3.bf16.msra.mxu1 %v3123_v8 }
  0x1c   :  { %2875 = vmatprep.subr.bf16.mxu0 %v3124_v9  ;;  %3108 = vmatprep.subr.bf16.mxu1 %v3124_v9 }
  0x1f   :  { %2876 = vmatpush3.bf16.msra.mxu0 %v3124_v9  ;;  %3116 = vmatpush3.bf16.msra.mxu1 %v3124_v9  ;;  %v3189_v9 = vld [vmem:[%s4346_s4] sm:$0xff]  }
  0x20   :  { %2909 = vmatprep.subr.bf16.mxu0 %v3189_v9 }
  0x22   :  { %2878 = vmatmul.mubr.bf16.vlgmr.msra.gmra.mrb[0].mxu0 %v3127_v10  ;;  %2894 = vmatmul.mubr.bf16.vlgmr.msra.gmra.mrb[0].mxu1 %v3128_v11  ;;  %v3498_v10 = vld [vmem:[%s4345_s1] ss:$8 sps:$4 sm:$0xff]  }
  0x23   :  { %2881 = vmatprep.mubr.bf16.mxu0 %v3129_v12  ;;  %2897 = vmatprep.mubr.bf16.mxu1 %v3130_v13  ;;  %v3190_v11 = vld [vmem:[%s4346_s4 + $0x8] sm:$0xff]   ;;  %v3506_v12 = vld [vmem:[%s4345_s1 + $0x14] ss:$8 sps:$4 sm:$0xff]  }
  0x24   :  { %v3191_v13 = vld [vmem:[%s4346_s4 + $0x10] sm:$0xff]   ;;  %2910 = vmatpush3.bf16.msra.mxu0 %v3189_v9 }
  0x25   :  { %2911 = vmatprep.subr.bf16.mxu0 %v3190_v11 }
  0x28   :  { %2912 = vmatpush3.bf16.msra.mxu0 %v3190_v11 }
  0x29   :  { %2913 = vmatprep.subr.bf16.mxu0 %v3191_v13 }
  0x2a   :  { %2882 = vmatmul.mubr.bf16.gmra.mrb[4].mxu0 %v3131_v14  ;;  %2898 = vmatmul.mubr.bf16.gmra.mrb[4].mxu1 %v3132_v15  ;;  %v3516_v14 = vld [vmem:[%s4345_s1 + $0x10] ss:$8 sps:$4 sm:$0xff]   ;;  %v3521_v15 = vld [vmem:[%s4345_s1 + $0x24] ss:$8 sps:$4 sm:$0xff]  }
  0x2b   :  { %2885 = vmatprep.mubr.bf16.mxu0 %v3133_v16  ;;  %2901 = vmatprep.mubr.bf16.mxu1 %v3134_v17  ;;  %v3528_v16 = vld [vmem:[%s4345_s1 + $0x20] ss:$8 sps:$4 sm:$0xff]   ;;  %v3533_v17 = vld [vmem:[%s4345_s1 + $0x34] ss:$8 sps:$4 sm:$0xff]  }
  0x2c   :  { %2914 = vmatpush3.bf16.msra.mxu0 %v3191_v13 }
  0x32   :  { %2886 = vmatmul.mubr.bf16.gmra.mrb[8].mxu0 %v3135_v18  ;;  %2902 = vmatmul.mubr.bf16.gmra.mrb[8].mxu1 %v3136_v19  ;;  %v3540_v18 = vld [vmem:[%s4345_s1 + $0x30] ss:$8 sps:$4 sm:$0xff]   ;;  %v3545_v19 = vld [vmem:[%s4345_s1 + $0x44] ss:$8 sps:$4 sm:$0xff]  }
  0x33   :  { %2889 = vmatprep.mubr.bf16.mxu0 %v3137_v20  ;;  %2905 = vmatprep.mubr.bf16.mxu1 %v3138_v21  ;;  %v3552_v20 = vld [vmem:[%s4345_s1 + $0x40] ss:$8 sps:$4 sm:$0xff]   ;;  %v3557_v21 = vld [vmem:[%s4345_s1 + $0x54] ss:$8 sps:$4 sm:$0xff]  }
  0x3a   :  { %2890 = vmatmul.mubr.bf16.gmra.mrb[12].mxu0 %v3139_v22  ;;  %2906 = vmatmul.mubr.bf16.gmra.mrb[12].mxu1 %v3140_v23  ;;  %v3564_v22 = vld [vmem:[%s4345_s1 + $0x50] ss:$8 sps:$4 sm:$0xff]   ;;  %v3569_v23 = vld [vmem:[%s4345_s1 + $0x64] ss:$8 sps:$4 sm:$0xff]  }
  0x3b   :  { %642 = vmatprep.mubr.bf16.mxu1 %v3489_v24 }
  0xf5   :  { %v2879_v25 = vpop.f32.mrb[0].mxu0  ;;  %v2895_v26 = vpop.f32.mrb[0].mxu1 }
  0xf6   :  { %v300_v27 = vpop.f32.mrb[1].mxu0  ;;  %v364_v28 = vpop.f32.mrb[1].mxu1 }
  0xf7   :  { %v2880_v29 = vpop.f32.mrb[2].mxu0  ;;  %v2896_v30 = vpop.f32.mrb[2].mxu1 }
  0xf8   :  { %v428_v31 = vpack.c.bf16 %v2880_v29, %v2879_v25  ;;  %v436_v32 = vpack.c.bf16 %v2896_v30, %v2895_v26  ;;  %v303_v33 = vpop.f32.mrb[3].mxu0  ;;  %v367_v34 = vpop.f32.mrb[3].mxu1  ;;  %v3576_v25 = vld [vmem:[%s4345_s1 + $0x60] ss:$8 sps:$4 sm:$0xff]   ;;  %v3581_v26 = vld [vmem:[%s4345_s1 + $0x74] ss:$8 sps:$4 sm:$0xff]  }
  0xf9   :  { %v427_v35 = vpack.c.bf16 %v303_v33, %v300_v27  ;;  %v435_v36 = vpack.c.bf16 %v367_v34, %v364_v28  ;;  %v3588_v27 = vld [vmem:[%s4345_s1 + $0x70] ss:$8 sps:$4 sm:$0xff]   ;;  %v3593_v28 = vld [vmem:[%s4345_s1 + $0x84] ss:$8 sps:$4 sm:$0xff]   ;;  %v3600_v29 = vld [vmem:[%s4345_s1 + $0x80] ss:$8 sps:$4 sm:$0xff]  }
  0xfa   :  { %v3605_v30 = vld [vmem:[%s4345_s1 + $0x94] ss:$8 sps:$4 sm:$0xff]   ;;  %v3624_v33 = vld [vmem:[%s4345_s1 + $0xa0] ss:$8 sps:$4 sm:$0xff]  }
  0xfb   :  { %2541 = vmatprep.subr.bf16.mxu1 %v435_v36  ;;  %v3629_v34 = vld [vmem:[%s4345_s1 + $0xb4] ss:$8 sps:$4 sm:$0xff]   ;;  %v3639_v36 = vld [vmem:[%s4345_s1 + $0xb0] ss:$8 sps:$4 sm:$0xff]  }
  0xfc   :  { %2542 = vmatpush3.bf16.msra.mxu1 %v427_v35  ;;  %v3192_v35 = vld [vmem:[%s4346_s4 + $0x18] sm:$0xff]  }
  0xfd   :  { %v2883_v37 = vpop.f32.mrb[4].mxu0  ;;  %v2899_v38 = vpop.f32.mrb[4].mxu1  ;;  %2543 = vmatprep.subr.bf16.mxu1 %v436_v32  ;;  %v3617_v32 = vld [vmem:[%s4345_s1 + $0xa4] ss:$8 sps:$4 sm:$0xff]   ;;  %2915 = vmatprep.subr.bf16.mxu0 %v3192_v35 }
  0xfe   :  { %v316_v39 = vpop.f32.mrb[5].mxu0  ;;  %v380_v40 = vpop.f32.mrb[5].mxu1  ;;  %2916 = vmatpush3.bf16.msra.mxu0 %v3192_v35 }
  0xff   :  { %v2884_v41 = vpop.f32.mrb[6].mxu0  ;;  %v2900_v42 = vpop.f32.mrb[6].mxu1 }
 0x100   :  { %v430_v43 = vpack.c.bf16 %v2884_v41, %v2883_v37  ;;  %v438_v44 = vpack.c.bf16 %v2900_v42, %v2899_v38  ;;  %v319_v45 = vpop.f32.mrb[7].mxu0  ;;  %v383_v46 = vpop.f32.mrb[7].mxu1  ;;  %2544 = vmatpush3.bf16.msra.mxu1 %v428_v31  ;;  %v3612_v31 = vld [vmem:[%s4345_s1 + $0x90] ss:$8 sps:$4 sm:$0xff]   ;;  %v3644_v37 = vld [vmem:[%s4345_s1 + $0xc4] ss:$8 sps:$4 sm:$0xff]  }
 0x101   :  { %v429_v47 = vpack.c.bf16 %v319_v45, %v316_v39  ;;  %v437_v48 = vpack.c.bf16 %v383_v46, %v380_v40  ;;  %v3193_v38 = vld [vmem:[%s4346_s4 + $0x20] sm:$0xff]   ;;  %v3194_v39 = vld [vmem:[%s4346_s4 + $0x28] sm:$0xff]   ;;  %v3662_v41 = vld [vmem:[%s4345_s1 + $0xd4] ss:$8 sps:$4 sm:$0xff]  }
 0x102   :  { %2917 = vmatprep.subr.bf16.mxu0 %v3193_v38  ;;  %v3657_v40 = vld [vmem:[%s4345_s1 + $0xc0] ss:$8 sps:$4 sm:$0xff]   ;;  %v3195_v42 = vld [vmem:[%s4346_s4 + $0x30] sm:$0xff]   ;;  %v3680_v45 = vld [vmem:[%s4345_s1 + $0xe4] ss:$8 sps:$4 sm:$0xff]  }
 0x103   :  { %2545 = vmatprep.subr.bf16.mxu1 %v437_v48  ;;  %2918 = vmatpush3.bf16.msra.mxu0 %v3193_v38  ;;  %v3687_v46 = vld [vmem:[%s4345_s1 + $0xe0] ss:$8 sps:$4 sm:$0xff]   ;;  %v3699_v48 = vld [vmem:[%s4345_s1 + $0xf0] ss:$8 sps:$4 sm:$0xff]  }
 0x104   :  { %2546 = vmatpush3.bf16.msra.mxu1 %v429_v47  ;;  %2919 = vmatprep.subr.bf16.mxu0 %v3194_v39  ;;  %v3692_v47 = vld [vmem:[%s4345_s1 + $0xf4] ss:$8 sps:$4 sm:$0xff]  }
 0x105   :  { %v2887_v49 = vpop.f32.mrb[8].mxu0  ;;  %v2903_v50 = vpop.f32.mrb[8].mxu1  ;;  %2547 = vmatprep.subr.bf16.mxu1 %v438_v44  ;;  %v3675_v44 = vld [vmem:[%s4345_s1 + $0xd0] ss:$8 sps:$4 sm:$0xff]  }
 0x106   :  { %v332_v51 = vpop.f32.mrb[9].mxu0  ;;  %v396_v52 = vpop.f32.mrb[9].mxu1 }
 0x107   :  { %v2888_v53 = vpop.f32.mrb[10].mxu0  ;;  %v2904_v54 = vpop.f32.mrb[10].mxu1  ;;  %2920 = vmatpush3.bf16.msra.mxu0 %v3194_v39 }
 0x108   :  { %v432_v55 = vpack.c.bf16 %v2888_v53, %v2887_v49  ;;  %v440_v56 = vpack.c.bf16 %v2904_v54, %v2903_v50  ;;  %v335_v57 = vpop.f32.mrb[11].mxu0  ;;  %v399_v58 = vpop.f32.mrb[11].mxu1  ;;  %2548 = vmatpush3.bf16.msra.mxu1 %v430_v43  ;;  %2921 = vmatprep.subr.bf16.mxu0 %v3195_v42  ;;  %v3196_v43 = vld [vmem:[%s4346_s4 + $0x38] sm:$0xff]   ;;  %v3705_v50 = vld [vmem:[%s4347_s3] ss:$0 sm:$0xff] }
 0x109   :  { %v431_v59 = vpack.c.bf16 %v335_v57, %v332_v51  ;;  %v439_v60 = vpack.c.bf16 %v399_v58, %v396_v52 }
 0x10b   :  { %2549 = vmatprep.subr.bf16.mxu1 %v439_v60  ;;  %2922 = vmatpush3.bf16.msra.mxu0 %v3195_v42 }
 0x10c   :  { %2550 = vmatpush3.bf16.msra.mxu1 %v431_v59  ;;  %2923 = vmatprep.subr.bf16.mxu0 %v3196_v43 }
 0x10d   :  { %v2891_v61 = vpop.f32.mrb[12].mxu0  ;;  %v2907_v62 = vpop.f32.mrb[12].mxu1  ;;  %2551 = vmatprep.subr.bf16.mxu1 %v440_v56 }
 0x10e   :  { %v348_v63 = vpop.f32.mrb[13].mxu0  ;;  %v412_v0 = vpop.f32.mrb[13].mxu1 }
 0x10f   :  { %v2892_v1 = vpop.f32.mrb[14].mxu0  ;;  %v2908_v2 = vpop.f32.mrb[14].mxu1  ;;  %2924 = vmatpush3.bf16.msra.mxu0 %v3196_v43 }
 0x110   :  { %v434_v3 = vpack.c.bf16 %v2892_v1, %v2891_v61  ;;  %v442_v4 = vpack.c.bf16 %v2908_v2, %v2907_v62  ;;  %v351_v5 = vpop.f32.mrb[15].mxu0  ;;  %v415_v6 = vpop.f32.mrb[15].mxu1  ;;  %2552 = vmatpush3.bf16.msra.mxu1 %v432_v55 }
 0x111   :  { %v433_v7 = vpack.c.bf16 %v351_v5, %v348_v63  ;;  %v441_v8 = vpack.c.bf16 %v415_v6, %v412_v0 }
 0x113   :  { %2553 = vmatprep.subr.bf16.mxu1 %v441_v8 }
 0x114   :  { %2554 = vmatpush3.bf16.msra.mxu1 %v433_v7 }
 0x115   :  { %2555 = vmatprep.subr.bf16.mxu1 %v442_v4 }
 0x118   :  { %2556 = vmatpush3.bf16.msra.mxu1 %v434_v3 }
 0x11b   :  { %643 = vmatmul.mubr.bf16.vlgmr.msra.gmra.mrb[16].mxu1 %v3498_v10 }
 0x11c   :  { %650 = vmatprep.mubr.bf16.mxu1 %v3506_v12 }
 0x123   :  { %651 = vmatmul.mubr.bf16.gmra.mrb[20].mxu1 %v3516_v14 }
 0x124   :  { %658 = vmatprep.mubr.bf16.mxu1 %v3521_v15 }
 0x12b   :  { %659 = vmatmul.mubr.bf16.gmra.mrb[24].mxu1 %v3528_v16 }
 0x12c   :  { %666 = vmatprep.mubr.bf16.mxu1 %v3533_v17 }
 0x133   :  { %667 = vmatmul.mubr.bf16.gmra.mrb[28].mxu1 %v3540_v18 }
 0x134   :  { %674 = vmatprep.mubr.bf16.mxu1 %v3545_v19 }
 0x13b   :  { %675 = vmatmul.mubr.bf16.gmra.mrb[32].mxu1 %v3552_v20 }
 0x13c   :  { %682 = vmatprep.mubr.bf16.mxu1 %v3557_v21 }
 0x143   :  { %683 = vmatmul.mubr.bf16.gmra.mrb[36].mxu1 %v3564_v22 }
 0x144   :  { %690 = vmatprep.mubr.bf16.mxu1 %v3569_v23 }
 0x14b   :  { %691 = vmatmul.mubr.bf16.gmra.mrb[40].mxu1 %v3576_v25 }
 0x14c   :  { %698 = vmatprep.mubr.bf16.mxu1 %v3581_v26 }
 0x153   :  { %699 = vmatmul.mubr.bf16.gmra.mrb[44].mxu1 %v3588_v27 }
 0x154   :  { %706 = vmatprep.mubr.bf16.mxu1 %v3593_v28 }
 0x15b   :  { %707 = vmatmul.mubr.bf16.gmra.mrb[48].mxu1 %v3600_v29 }
 0x15c   :  { %714 = vmatprep.mubr.bf16.mxu1 %v3605_v30 }
 0x163   :  { %715 = vmatmul.mubr.bf16.gmra.mrb[52].mxu1 %v3612_v31 }
 0x164   :  { %722 = vmatprep.mubr.bf16.mxu1 %v3617_v32 }
 0x16b   :  { %723 = vmatmul.mubr.bf16.gmra.mrb[56].mxu1 %v3624_v33 }
 0x16c   :  { %730 = vmatprep.mubr.bf16.mxu1 %v3629_v34 }
 0x173   :  { %731 = vmatmul.mubr.bf16.gmra.mrb[60].mxu1 %v3639_v36 }
 0x174   :  { %738 = vmatprep.mubr.bf16.mxu1 %v3644_v37 }
 0x17b   :  { %739 = vmatmul.mubr.bf16.gmra.mrb[64].mxu1 %v3657_v40 }
 0x17c   :  { %746 = vmatprep.mubr.bf16.mxu1 %v3662_v41 }
 0x183   :  { %747 = vmatmul.mubr.bf16.gmra.mrb[68].mxu1 %v3675_v44 }
 0x184   :  { %754 = vmatprep.mubr.bf16.mxu1 %v3680_v45 }
 0x18b   :  { %755 = vmatmul.mubr.bf16.gmra.mrb[72].mxu1 %v3687_v46 }
 0x18c   :  { %762 = vmatprep.mubr.bf16.mxu1 %v3692_v47 }
 0x193   :  { %763 = vmatmul.mubr.bf16.gmra.mrb[76].mxu1 %v3699_v48 }
 0x1ee   :  { %v2557_v49 = vpop.f32.mrb[16].mxu1 }
 0x1ef   :  { %v2558_v51 = vpop.f32.mrb[17].mxu1 }
 0x1f0   :  { %v2559_v52 = vadd.f32 %v2558_v51, %v2557_v49  ;;  %v2560_v53 = vpop.f32.mrb[18].mxu1 }
 0x1f1   :  { %v2561_v54 = vpop.f32.mrb[19].mxu1 }
 0x1f2   :  { %v645_v55 = vadd.f32 %v2559_v52, %v3705_v50  ;;  %v2562_v56 = vadd.f32 %v2561_v54, %v2560_v53 }
 0x1f4   :  { %v648_v57 = vadd.f32 %v2562_v56, %v3705_v50  ;;  %v771_v58 = vmax.f32 %v645_v55, 0.0 }
 0x1f6   :  { %v772_v59 = vmax.f32 %v648_v57, 0.0  ;;  %v2563_v60 = vpop.f32.mrb[20].mxu1 }
 0x1f7   :  { %v2564_v61 = vpop.f32.mrb[21].mxu1 }
 0x1f8   :  { %v2565_v62 = vadd.f32 %v2564_v61, %v2563_v60  ;;  %v2566_v63 = vpop.f32.mrb[22].mxu1  ;;  %v803_v0 = vpack.c.bf16 %v772_v59, %v771_v58 }
 0x1f9   :  { %v2567_v1 = vpop.f32.mrb[23].mxu1 }
 0x1fa   :  { %v653_v2 = vadd.f32 %v2565_v62, %v3705_v50  ;;  %v2568_v3 = vadd.f32 %v2567_v1, %v2566_v63  ;;  %2925 = vmatprep.mubr.bf16.mxu0 %v803_v0 }
 0x1fc   :  { %v656_v4 = vadd.f32 %v2568_v3, %v3705_v50  ;;  %v773_v5 = vmax.f32 %v653_v2, 0.0 }
 0x1fe   :  { %v774_v6 = vmax.f32 %v656_v4, 0.0  ;;  %v2569_v7 = vpop.f32.mrb[24].mxu1 }
 0x1ff   :  { %v2570_v8 = vpop.f32.mrb[25].mxu1 }
 0x200   :  { %v804_v9 = vpack.c.bf16 %v774_v6, %v773_v5  ;;  %v2571_v11 = vadd.f32 %v2570_v8, %v2569_v7  ;;  %v2572_v13 = vpop.f32.mrb[26].mxu1 }
 0x201   :  { %v2573_v35 = vpop.f32.mrb[27].mxu1 }
 0x202   :  { %v661_v38 = vadd.f32 %v2571_v11, %v3705_v50  ;;  %v2574_v39 = vadd.f32 %v2573_v35, %v2572_v13  ;;  %2926 = vmatmul.mubr.bf16.vlgmr.msra.gmra.mrb[16].mxu0 %v804_v9 }
 0x204   :  { %v664_v42 = vadd.f32 %v2574_v39, %v3705_v50  ;;  %v775_v43 = vmax.f32 %v661_v38, 0.0 }
 0x206   :  { %v776_v49 = vmax.f32 %v664_v42, 0.0  ;;  %v2575_v51 = vpop.f32.mrb[28].mxu1 }
 0x207   :  { %v2576_v52 = vpop.f32.mrb[29].mxu1 }
 0x208   :  { %v2577_v53 = vadd.f32 %v2576_v52, %v2575_v51  ;;  %v2578_v54 = vpop.f32.mrb[30].mxu1  ;;  %v805_v55 = vpack.c.bf16 %v776_v49, %v775_v43 }
 0x209   :  { %v2579_v56 = vpop.f32.mrb[31].mxu1 }
 0x20a   :  { %v669_v57 = vadd.f32 %v2577_v53, %v3705_v50  ;;  %v2580_v58 = vadd.f32 %v2579_v56, %v2578_v54  ;;  %2929 = vmatprep.mubr.bf16.mxu0 %v805_v55 }
 0x20c   :  { %v672_v59 = vadd.f32 %v2580_v58, %v3705_v50  ;;  %v777_v60 = vmax.f32 %v669_v57, 0.0 }
 0x20e   :  { %v778_v61 = vmax.f32 %v672_v59, 0.0  ;;  %v2581_v62 = vpop.f32.mrb[32].mxu1 }
 0x20f   :  { %v2582_v63 = vpop.f32.mrb[33].mxu1 }
 0x210   :  { %v2583_v0 = vadd.f32 %v2582_v63, %v2581_v62  ;;  %v2584_v1 = vpop.f32.mrb[34].mxu1  ;;  %v806_v2 = vpack.c.bf16 %v778_v61, %v777_v60 }
 0x211   :  { %v2585_v3 = vpop.f32.mrb[35].mxu1 }
 0x212   :  { %v677_v4 = vadd.f32 %v2583_v0, %v3705_v50  ;;  %v2586_v5 = vadd.f32 %v2585_v3, %v2584_v1  ;;  %2930 = vmatmul.mubr.bf16.gmra.mrb[20].mxu0 %v806_v2 }
 0x214   :  { %v680_v6 = vadd.f32 %v2586_v5, %v3705_v50  ;;  %v779_v7 = vmax.f32 %v677_v4, 0.0 }
 0x216   :  { %v780_v8 = vmax.f32 %v680_v6, 0.0  ;;  %v2587_v9 = vpop.f32.mrb[36].mxu1 }
 0x217   :  { %v2588_v11 = vpop.f32.mrb[37].mxu1 }
 0x218   :  { %v2589_v13 = vadd.f32 %v2588_v11, %v2587_v9  ;;  %v2590_v35 = vpop.f32.mrb[38].mxu1  ;;  %v807_v38 = vpack.c.bf16 %v780_v8, %v779_v7 }
 0x219   :  { %v2591_v39 = vpop.f32.mrb[39].mxu1 }
 0x21a   :  { %v685_v42 = vadd.f32 %v2589_v13, %v3705_v50  ;;  %v2592_v43 = vadd.f32 %v2591_v39, %v2590_v35  ;;  %2933 = vmatprep.mubr.bf16.mxu0 %v807_v38 }
 0x21c   :  { %v688_v49 = vadd.f32 %v2592_v43, %v3705_v50  ;;  %v781_v51 = vmax.f32 %v685_v42, 0.0 }
 0x21e   :  { %v782_v52 = vmax.f32 %v688_v49, 0.0  ;;  %v2593_v53 = vpop.f32.mrb[40].mxu1 }
 0x21f   :  { %v2594_v54 = vpop.f32.mrb[41].mxu1 }
 0x220   :  { %v2595_v55 = vadd.f32 %v2594_v54, %v2593_v53  ;;  %v2596_v56 = vpop.f32.mrb[42].mxu1  ;;  %v808_v57 = vpack.c.bf16 %v782_v52, %v781_v51 }
 0x221   :  { %v2597_v58 = vpop.f32.mrb[43].mxu1 }
 0x222   :  { %v693_v59 = vadd.f32 %v2595_v55, %v3705_v50  ;;  %v2598_v60 = vadd.f32 %v2597_v58, %v2596_v56  ;;  %2934 = vmatmul.mubr.bf16.gmra.mrb[24].mxu0 %v808_v57 }
 0x224   :  { %v696_v61 = vadd.f32 %v2598_v60, %v3705_v50  ;;  %v783_v62 = vmax.f32 %v693_v59, 0.0 }
 0x226   :  { %v784_v63 = vmax.f32 %v696_v61, 0.0  ;;  %v2599_v0 = vpop.f32.mrb[44].mxu1 }
 0x227   :  { %v2600_v1 = vpop.f32.mrb[45].mxu1 }
 0x228   :  { %v2601_v2 = vadd.f32 %v2600_v1, %v2599_v0  ;;  %v2602_v3 = vpop.f32.mrb[46].mxu1  ;;  %v809_v4 = vpack.c.bf16 %v784_v63, %v783_v62 }
 0x229   :  { %v2603_v5 = vpop.f32.mrb[47].mxu1 }
 0x22a   :  { %v701_v6 = vadd.f32 %v2601_v2, %v3705_v50  ;;  %v2604_v7 = vadd.f32 %v2603_v5, %v2602_v3  ;;  %2937 = vmatprep.mubr.bf16.mxu0 %v809_v4 }
 0x22c   :  { %v704_v8 = vadd.f32 %v2604_v7, %v3705_v50  ;;  %v785_v9 = vmax.f32 %v701_v6, 0.0 }
 0x22e   :  { %v786_v11 = vmax.f32 %v704_v8, 0.0  ;;  %v2605_v13 = vpop.f32.mrb[48].mxu1 }
 0x22f   :  { %v2606_v35 = vpop.f32.mrb[49].mxu1 }
 0x230   :  { %v2607_v38 = vadd.f32 %v2606_v35, %v2605_v13  ;;  %v2608_v39 = vpop.f32.mrb[50].mxu1  ;;  %v810_v42 = vpack.c.bf16 %v786_v11, %v785_v9 }
 0x231   :  { %v2609_v43 = vpop.f32.mrb[51].mxu1 }
 0x232   :  { %v709_v49 = vadd.f32 %v2607_v38, %v3705_v50  ;;  %v2610_v51 = vadd.f32 %v2609_v43, %v2608_v39  ;;  %2938 = vmatmul.mubr.bf16.gmra.mrb[28].mxu0 %v810_v42 }
 0x234   :  { %v712_v52 = vadd.f32 %v2610_v51, %v3705_v50  ;;  %v787_v53 = vmax.f32 %v709_v49, 0.0 }
 0x236   :  { %v788_v54 = vmax.f32 %v712_v52, 0.0  ;;  %v2611_v55 = vpop.f32.mrb[52].mxu1 }
 0x237   :  { %v2612_v56 = vpop.f32.mrb[53].mxu1 }
 0x238   :  { %v2613_v57 = vadd.f32 %v2612_v56, %v2611_v55  ;;  %v2614_v58 = vpop.f32.mrb[54].mxu1  ;;  %v811_v59 = vpack.c.bf16 %v788_v54, %v787_v53 }
 0x239   :  { %v2615_v60 = vpop.f32.mrb[55].mxu1 }
 0x23a   :  { %v717_v61 = vadd.f32 %v2613_v57, %v3705_v50  ;;  %v2616_v62 = vadd.f32 %v2615_v60, %v2614_v58  ;;  %2941 = vmatprep.mubr.bf16.mxu0 %v811_v59 }
 0x23c   :  { %v720_v63 = vadd.f32 %v2616_v62, %v3705_v50  ;;  %v789_v0 = vmax.f32 %v717_v61, 0.0 }
 0x23e   :  { %v790_v1 = vmax.f32 %v720_v63, 0.0  ;;  %v2617_v2 = vpop.f32.mrb[56].mxu1 }
 0x23f   :  { %v2618_v3 = vpop.f32.mrb[57].mxu1 }
 0x240   :  { %v2619_v4 = vadd.f32 %v2618_v3, %v2617_v2  ;;  %v2620_v5 = vpop.f32.mrb[58].mxu1  ;;  %v812_v6 = vpack.c.bf16 %v790_v1, %v789_v0 }
 0x241   :  { %v2621_v7 = vpop.f32.mrb[59].mxu1 }
 0x242   :  { %v725_v8 = vadd.f32 %v2619_v4, %v3705_v50  ;;  %v2622_v9 = vadd.f32 %v2621_v7, %v2620_v5  ;;  %2942 = vmatmul.mubr.bf16.gmra.mrb[32].mxu0 %v812_v6 }
 0x244   :  { %v728_v11 = vadd.f32 %v2622_v9, %v3705_v50  ;;  %v791_v13 = vmax.f32 %v725_v8, 0.0 }
 0x246   :  { %v792_v35 = vmax.f32 %v728_v11, 0.0  ;;  %v2623_v38 = vpop.f32.mrb[60].mxu1 }
 0x247   :  { %v2624_v39 = vpop.f32.mrb[61].mxu1 }
 0x248   :  { %v2625_v42 = vadd.f32 %v2624_v39, %v2623_v38  ;;  %v2626_v43 = vpop.f32.mrb[62].mxu1  ;;  %v813_v49 = vpack.c.bf16 %v792_v35, %v791_v13 }
 0x249   :  { %v2627_v51 = vpop.f32.mrb[63].mxu1 }
 0x24a   :  { %v733_v52 = vadd.f32 %v2625_v42, %v3705_v50  ;;  %v2628_v53 = vadd.f32 %v2627_v51, %v2626_v43  ;;  %2945 = vmatprep.mubr.bf16.mxu0 %v813_v49 }
 0x24c   :  { %v736_v54 = vadd.f32 %v2628_v53, %v3705_v50  ;;  %v793_v55 = vmax.f32 %v733_v52, 0.0 }
 0x24e   :  { %v794_v56 = vmax.f32 %v736_v54, 0.0  ;;  %v2629_v57 = vpop.f32.mrb[64].mxu1 }
 0x24f   :  { %v2630_v58 = vpop.f32.mrb[65].mxu1 }
 0x250   :  { %v2631_v59 = vadd.f32 %v2630_v58, %v2629_v57  ;;  %v2632_v60 = vpop.f32.mrb[66].mxu1  ;;  %v814_v61 = vpack.c.bf16 %v794_v56, %v793_v55 }
 0x251   :  { %v2633_v62 = vpop.f32.mrb[67].mxu1 }
 0x252   :  { %v741_v63 = vadd.f32 %v2631_v59, %v3705_v50  ;;  %v2634_v0 = vadd.f32 %v2633_v62, %v2632_v60  ;;  %2946 = vmatmul.mubr.bf16.gmra.mrb[36].mxu0 %v814_v61 }
 0x254   :  { %v744_v1 = vadd.f32 %v2634_v0, %v3705_v50  ;;  %v795_v2 = vmax.f32 %v741_v63, 0.0 }
 0x256   :  { %v796_v3 = vmax.f32 %v744_v1, 0.0  ;;  %v2635_v4 = vpop.f32.mrb[68].mxu1 }
 0x257   :  { %v2636_v5 = vpop.f32.mrb[69].mxu1 }
 0x258   :  { %v2637_v6 = vadd.f32 %v2636_v5, %v2635_v4  ;;  %v2638_v7 = vpop.f32.mrb[70].mxu1  ;;  %v815_v8 = vpack.c.bf16 %v796_v3, %v795_v2 }
 0x259   :  { %v2639_v9 = vpop.f32.mrb[71].mxu1 }
 0x25a   :  { %v749_v11 = vadd.f32 %v2637_v6, %v3705_v50  ;;  %v2640_v13 = vadd.f32 %v2639_v9, %v2638_v7  ;;  %2949 = vmatprep.mubr.bf16.mxu0 %v815_v8 }
 0x25c   :  { %v752_v35 = vadd.f32 %v2640_v13, %v3705_v50  ;;  %v797_v38 = vmax.f32 %v749_v11, 0.0 }
 0x25e   :  { %v798_v39 = vmax.f32 %v752_v35, 0.0  ;;  %v2641_v42 = vpop.f32.mrb[72].mxu1 }
 0x25f   :  { %v2642_v43 = vpop.f32.mrb[73].mxu1 }
 0x260   :  { %v2643_v49 = vadd.f32 %v2642_v43, %v2641_v42  ;;  %v2644_v51 = vpop.f32.mrb[74].mxu1  ;;  %v816_v52 = vpack.c.bf16 %v798_v39, %v797_v38 }
 0x261   :  { %v2645_v53 = vpop.f32.mrb[75].mxu1 }
 0x262   :  { %v757_v54 = vadd.f32 %v2643_v49, %v3705_v50  ;;  %v2646_v55 = vadd.f32 %v2645_v53, %v2644_v51  ;;  %2950 = vmatmul.mubr.bf16.gmra.mrb[40].mxu0 %v816_v52 }
 0x264   :  { %v760_v56 = vadd.f32 %v2646_v55, %v3705_v50  ;;  %v799_v57 = vmax.f32 %v757_v54, 0.0 }
 0x266   :  { %v800_v58 = vmax.f32 %v760_v56, 0.0  ;;  %v2647_v59 = vpop.f32.mrb[76].mxu1 }
 0x267   :  { %v2648_v60 = vpop.f32.mrb[77].mxu1 }
 0x268   :  { %v2649_v61 = vadd.f32 %v2648_v60, %v2647_v59  ;;  %v2650_v62 = vpop.f32.mrb[78].mxu1  ;;  %v817_v63 = vpack.c.bf16 %v800_v58, %v799_v57 }
 0x269   :  { %v2651_v0 = vpop.f32.mrb[79].mxu1 }
 0x26a   :  { %v765_v1 = vadd.f32 %v2649_v61, %v3705_v50  ;;  %v2652_v2 = vadd.f32 %v2651_v0, %v2650_v62  ;;  %2953 = vmatprep.mubr.bf16.mxu0 %v817_v63 }
 0x26c   :  { %v768_v3 = vadd.f32 %v2652_v2, %v3705_v50  ;;  %v801_v4 = vmax.f32 %v765_v1, 0.0 }
 0x26e   :  { %v802_v5 = vmax.f32 %v768_v3, 0.0 }
 0x270   :  { %v818_v6 = vpack.c.bf16 %v802_v5, %v801_v4 }
 0x272   :  { %2954 = vmatmul.mubr.bf16.gmra.mrb[44].mxu0 %v818_v6 }
 0x273   :  { %1099 = vmatprep.mubr.bf16.mxu0 %v3489_v24 }
 0x2d5   :  { %v2927_v7 = vpop.f32.mrb[16].mxu0 }
 0x2d6   :  { %v917_v8 = vpop.f32.mrb[17].mxu0 }
 0x2d7   :  { %v2928_v9 = vpop.f32.mrb[18].mxu0 }
 0x2d8   :  { %v1045_v11 = vpack.c.bf16 %v2928_v9, %v2927_v7  ;;  %v920_v13 = vpop.f32.mrb[19].mxu0 }
 0x2d9   :  { %v1044_v35 = vpack.c.bf16 %v920_v13, %v917_v8 }
 0x2e5   :  { %v2931_v38 = vpop.f32.mrb[20].mxu0 }
 0x2e6   :  { %v933_v39 = vpop.f32.mrb[21].mxu0 }
 0x2e7   :  { %v2932_v42 = vpop.f32.mrb[22].mxu0 }
 0x2e8   :  { %v1047_v43 = vpack.c.bf16 %v2932_v42, %v2931_v38  ;;  %v936_v49 = vpop.f32.mrb[23].mxu0 }
 0x2e9   :  { %v1046_v51 = vpack.c.bf16 %v936_v49, %v933_v39 }
 0x2f5   :  { %v2935_v52 = vpop.f32.mrb[24].mxu0 }
 0x2f6   :  { %v949_v50 = vpop.f32.mrb[25].mxu0 }
 0x2f7   :  { %v2936_v53 = vpop.f32.mrb[26].mxu0 }
 0x2f8   :  { %v1049_v54 = vpack.c.bf16 %v2936_v53, %v2935_v52  ;;  %v952_v55 = vpop.f32.mrb[27].mxu0 }
 0x2f9   :  { %v1048_v56 = vpack.c.bf16 %v952_v55, %v949_v50 }
 0x305   :  { %v2939_v57 = vpop.f32.mrb[28].mxu0 }
 0x306   :  { %v965_v24 = vpop.f32.mrb[29].mxu0 }
 0x307   :  { %v2940_v58 = vpop.f32.mrb[30].mxu0 }
 0x308   :  { %v1051_v59 = vpack.c.bf16 %v2940_v58, %v2939_v57  ;;  %v968_v60 = vpop.f32.mrb[31].mxu0  ;;  %v3206_v58 = vld [vmem:[%s4350_s8 + $0x8] sm:$0xff]  }
 0x309   :  { %v1050_v61 = vpack.c.bf16 %v968_v60, %v965_v24 }
 0x315   :  { %v2943_v62 = vpop.f32.mrb[32].mxu0 }
 0x316   :  { %v981_v63 = vpop.f32.mrb[33].mxu0 }
 0x317   :  { %v2944_v0 = vpop.f32.mrb[34].mxu0 }
 0x318   :  { %v1053_v1 = vpack.c.bf16 %v2944_v0, %v2943_v62  ;;  %v984_v2 = vpop.f32.mrb[35].mxu0 }
 0x319   :  { %v1052_v3 = vpack.c.bf16 %v984_v2, %v981_v63  ;;  %v3207_v63 = vld [vmem:[%s4350_s8 + $0x10] sm:$0xff]  }
 0x31b   :  { %2677 = vmatprep.subr.bf16.mxu0 %v1052_v3 }
 0x31c   :  { %2678 = vmatpush3.bf16.msra.mxu0 %v1044_v35 }
 0x31d   :  { %2679 = vmatprep.subr.bf16.mxu0 %v1053_v1 }
 0x320   :  { %2680 = vmatpush3.bf16.msra.mxu0 %v1045_v11 }
 0x325   :  { %v2947_v4 = vpop.f32.mrb[36].mxu0 }
 0x326   :  { %v997_v5 = vpop.f32.mrb[37].mxu0 }
 0x327   :  { %v2948_v6 = vpop.f32.mrb[38].mxu0 }
 0x328   :  { %v1055_v7 = vpack.c.bf16 %v2948_v6, %v2947_v4  ;;  %v1000_v8 = vpop.f32.mrb[39].mxu0 }
 0x329   :  { %v1054_v9 = vpack.c.bf16 %v1000_v8, %v997_v5 }
 0x32b   :  { %2681 = vmatprep.subr.bf16.mxu0 %v1054_v9 }
 0x32c   :  { %2682 = vmatpush3.bf16.msra.mxu0 %v1046_v51  ;;  %v3198_v51 = vld [vmem:[%s4348_s6 + $0x8] sm:$0xff]  }
 0x32d   :  { %2683 = vmatprep.subr.bf16.mxu0 %v1055_v7  ;;  %v3208_v7 = vld [vmem:[%s4350_s8 + $0x18] sm:$0xff]  }
 0x330   :  { %2684 = vmatpush3.bf16.msra.mxu0 %v1047_v43  ;;  %v3197_v43 = vld [vmem:[%s4348_s6] sm:$0xff]  }
 0x331   :  { %2957 = vmatprep.subr.bf16.mxu1 %v3197_v43 }
 0x332   :  { %2958 = vmatpush3.bf16.msra.mxu1 %v3197_v43 }
 0x333   :  { %2959 = vmatprep.subr.bf16.mxu1 %v3198_v51 }
 0x335   :  { %v2951_v13 = vpop.f32.mrb[40].mxu0 }
 0x336   :  { %v1013_v38 = vpop.f32.mrb[41].mxu0  ;;  %2960 = vmatpush3.bf16.msra.mxu1 %v3198_v51 }
 0x337   :  { %v2952_v39 = vpop.f32.mrb[42].mxu0 }
 0x338   :  { %v1057_v42 = vpack.c.bf16 %v2952_v39, %v2951_v13  ;;  %v1016_v49 = vpop.f32.mrb[43].mxu0  ;;  %v3209_v39 = vld [vmem:[%s4350_s8 + $0x20] sm:$0xff]  }
 0x339   :  { %v1056_v52 = vpack.c.bf16 %v1016_v49, %v1013_v38 }
 0x33b   :  { %2685 = vmatprep.subr.bf16.mxu0 %v1056_v52 }
 0x33c   :  { %2686 = vmatpush3.bf16.msra.mxu0 %v1048_v56  ;;  %v3200_v56 = vld [vmem:[%s4348_s6 + $0x18] sm:$0xff]  }
 0x33d   :  { %2687 = vmatprep.subr.bf16.mxu0 %v1057_v42 }
 0x340   :  { %2688 = vmatpush3.bf16.msra.mxu0 %v1049_v54  ;;  %v3199_v54 = vld [vmem:[%s4348_s6 + $0x10] sm:$0xff]  }
 0x341   :  { %2961 = vmatprep.subr.bf16.mxu1 %v3199_v54 }
 0x342   :  { %2962 = vmatpush3.bf16.msra.mxu1 %v3199_v54 }
 0x343   :  { %2963 = vmatprep.subr.bf16.mxu1 %v3200_v56 }
 0x345   :  { %v2955_v11 = vpop.f32.mrb[44].mxu0 }
 0x346   :  { %v1029_v35 = vpop.f32.mrb[45].mxu0  ;;  %2964 = vmatpush3.bf16.msra.mxu1 %v3200_v56 }
 0x347   :  { %v2956_v50 = vpop.f32.mrb[46].mxu0 }
 0x348   :  { %v1059_v53 = vpack.c.bf16 %v2956_v50, %v2955_v11  ;;  %v1032_v55 = vpop.f32.mrb[47].mxu0 }
 0x349   :  { %v1058_v57 = vpack.c.bf16 %v1032_v55, %v1029_v35  ;;  %v3210_v55 = vld [vmem:[%s4350_s8 + $0x28] sm:$0xff]  }
 0x34b   :  { %2689 = vmatprep.subr.bf16.mxu0 %v1058_v57 }
 0x34c   :  { %2690 = vmatpush3.bf16.msra.mxu0 %v1050_v61 }
 0x34d   :  { %2691 = vmatprep.subr.bf16.mxu0 %v1059_v53 }
 0x350   :  { %2692 = vmatpush3.bf16.msra.mxu0 %v1051_v59 }
 0x353   :  { %1100 = vmatmul.mubr.bf16.vlgmr.msra.gmra.mrb[48].mxu0 %v3498_v10  ;;  %v3201_v10 = vld [vmem:[%s4348_s6 + $0x20] sm:$0xff]  }
 0x354   :  { %1107 = vmatprep.mubr.bf16.mxu0 %v3506_v12  ;;  %2965 = vmatprep.subr.bf16.mxu1 %v3201_v10  ;;  %v3202_v12 = vld [vmem:[%s4348_s6 + $0x28] sm:$0xff]  }
 0x355   :  { %2966 = vmatpush3.bf16.msra.mxu1 %v3201_v10 }
 0x356   :  { %2967 = vmatprep.subr.bf16.mxu1 %v3202_v12 }
 0x359   :  { %2968 = vmatpush3.bf16.msra.mxu1 %v3202_v12 }
 0x35b   :  { %1108 = vmatmul.mubr.bf16.gmra.mrb[52].mxu0 %v3516_v14  ;;  %v3203_v14 = vld [vmem:[%s4348_s6 + $0x30] sm:$0xff]  }
 0x35c   :  { %1115 = vmatprep.mubr.bf16.mxu0 %v3521_v15  ;;  %2969 = vmatprep.subr.bf16.mxu1 %v3203_v14  ;;  %v3204_v15 = vld [vmem:[%s4348_s6 + $0x38] sm:$0xff]  }
 0x35d   :  { %2970 = vmatpush3.bf16.msra.mxu1 %v3203_v14 }
 0x35e   :  { %2971 = vmatprep.subr.bf16.mxu1 %v3204_v15 }
 0x361   :  { %2972 = vmatpush3.bf16.msra.mxu1 %v3204_v15 }
 0x363   :  { %1116 = vmatmul.mubr.bf16.gmra.mrb[56].mxu0 %v3528_v16 }
 0x364   :  { %1123 = vmatprep.mubr.bf16.mxu0 %v3533_v17  ;;  %v3798_v17 = vld [vmem:[%s4349_s5] ss:$0 sm:$0xff] }
 0x36b   :  { %1124 = vmatmul.mubr.bf16.gmra.mrb[60].mxu0 %v3540_v18 }
 0x36c   :  { %1131 = vmatprep.mubr.bf16.mxu0 %v3545_v19 }
 0x373   :  { %1132 = vmatmul.mubr.bf16.gmra.mrb[64].mxu0 %v3552_v20 }
 0x374   :  { %1139 = vmatprep.mubr.bf16.mxu0 %v3557_v21 }
 0x37b   :  { %1140 = vmatmul.mubr.bf16.gmra.mrb[68].mxu0 %v3564_v22 }
 0x37c   :  { %1147 = vmatprep.mubr.bf16.mxu0 %v3569_v23 }
 0x383   :  { %1148 = vmatmul.mubr.bf16.gmra.mrb[72].mxu0 %v3576_v25  ;;  %v3205_v25 = vld [vmem:[%s4350_s8] sm:$0xff]  }
 0x384   :  { %1155 = vmatprep.mubr.bf16.mxu0 %v3581_v26  ;;  %3005 = vmatprep.subr.bf16.mxu1 %v3205_v25 }
 0x38b   :  { %1156 = vmatmul.mubr.bf16.gmra.mrb[76].mxu0 %v3588_v27 }
 0x38c   :  { %1163 = vmatprep.mubr.bf16.mxu0 %v3593_v28 }
 0x393   :  { %1164 = vmatmul.mubr.bf16.gmra.mrb[80].mxu0 %v3600_v29 }
 0x394   :  { %1171 = vmatprep.mubr.bf16.mxu0 %v3605_v30 }
 0x39b   :  { %1172 = vmatmul.mubr.bf16.gmra.mrb[84].mxu0 %v3612_v31 }
 0x39c   :  { %1179 = vmatprep.mubr.bf16.mxu0 %v3617_v32 }
 0x3a3   :  { %1180 = vmatmul.mubr.bf16.gmra.mrb[88].mxu0 %v3624_v33 }
 0x3a4   :  { %1187 = vmatprep.mubr.bf16.mxu0 %v3629_v34 }
 0x3ab   :  { %1188 = vmatmul.mubr.bf16.gmra.mrb[92].mxu0 %v3639_v36 }
 0x3ac   :  { %1195 = vmatprep.mubr.bf16.mxu0 %v3644_v37 }
 0x3b3   :  { %1196 = vmatmul.mubr.bf16.gmra.mrb[96].mxu0 %v3657_v40 }
 0x3b4   :  { %1203 = vmatprep.mubr.bf16.mxu0 %v3662_v41 }
 0x3bb   :  { %1204 = vmatmul.mubr.bf16.gmra.mrb[100].mxu0 %v3675_v44 }
 0x3bc   :  { %1211 = vmatprep.mubr.bf16.mxu0 %v3680_v45 }
 0x3c3   :  { %1212 = vmatmul.mubr.bf16.gmra.mrb[104].mxu0 %v3687_v46 }
 0x3c4   :  { %1219 = vmatprep.mubr.bf16.mxu0 %v3692_v47 }
 0x3cb   :  { %1220 = vmatmul.mubr.bf16.gmra.mrb[108].mxu0 %v3699_v48 }
 0x426   :  { %v2693_v16 = vpop.f32.mrb[48].mxu0 }
 0x427   :  { %v2694_v18 = vpop.f32.mrb[49].mxu0 }
 0x428   :  { %v2695_v19 = vadd.f32 %v2694_v18, %v2693_v16  ;;  %v2696_v20 = vpop.f32.mrb[50].mxu0 }
 0x429   :  { %v2697_v21 = vpop.f32.mrb[51].mxu0 }
 0x42a   :  { %v1102_v22 = vadd.f32 %v2695_v19, %v3798_v17  ;;  %v2698_v23 = vadd.f32 %v2697_v21, %v2696_v20 }
 0x42c   :  { %v1105_v26 = vadd.f32 %v2698_v23, %v3798_v17  ;;  %v1228_v27 = vmax.f32 %v1102_v22, 0.0 }
 0x42e   :  { %v1229_v28 = vmax.f32 %v1105_v26, 0.0  ;;  %v2699_v29 = vpop.f32.mrb[52].mxu0 }
 0x42f   :  { %v2700_v30 = vpop.f32.mrb[53].mxu0 }
 0x430   :  { %v2701_v31 = vadd.f32 %v2700_v30, %v2699_v29  ;;  %v2702_v32 = vpop.f32.mrb[54].mxu0  ;;  %v1260_v33 = vpack.c.bf16 %v1229_v28, %v1228_v27 }
 0x431   :  { %v2703_v34 = vpop.f32.mrb[55].mxu0 }
 0x432   :  { %v1110_v36 = vadd.f32 %v2701_v31, %v3798_v17  ;;  %v2704_v37 = vadd.f32 %v2703_v34, %v2702_v32  ;;  %2973 = vmatprep.mubr.bf16.mxu1 %v1260_v33 }
 0x434   :  { %v1113_v40 = vadd.f32 %v2704_v37, %v3798_v17  ;;  %v1230_v41 = vmax.f32 %v1110_v36, 0.0 }
 0x436   :  { %v1231_v44 = vmax.f32 %v1113_v40, 0.0  ;;  %v2705_v45 = vpop.f32.mrb[56].mxu0 }
 0x437   :  { %v2706_v46 = vpop.f32.mrb[57].mxu0 }
 0x438   :  { %v1261_v47 = vpack.c.bf16 %v1231_v44, %v1230_v41  ;;  %v2707_v48 = vadd.f32 %v2706_v46, %v2705_v45  ;;  %v2708_v24 = vpop.f32.mrb[58].mxu0 }
 0x439   :  { %v2709_v59 = vpop.f32.mrb[59].mxu0 }
 0x43a   :  { %2974 = vmatmul.mubr.bf16.vlgmr.msra.gmra.mrb[80].mxu1 %v1261_v47  ;;  %v1118_v60 = vadd.f32 %v2707_v48, %v3798_v17  ;;  %v2710_v61 = vadd.f32 %v2709_v59, %v2708_v24 }
 0x43b   :  { %3006 = vmatpush3.bf16.msra.mxu1 %v3205_v25 }
 0x43c   :  { %v1121_v62 = vadd.f32 %v2710_v61, %v3798_v17  ;;  %3007 = vmatprep.subr.bf16.mxu1 %v3206_v58  ;;  %v1232_v0 = vmax.f32 %v1118_v60, 0.0 }
 0x43e   :  { %v1233_v1 = vmax.f32 %v1121_v62, 0.0  ;;  %v2711_v2 = vpop.f32.mrb[60].mxu0 }
 0x43f   :  { %v2712_v3 = vpop.f32.mrb[61].mxu0  ;;  %3008 = vmatpush3.bf16.msra.mxu1 %v3206_v58 }
 0x440   :  { %v2713_v4 = vadd.f32 %v2712_v3, %v2711_v2  ;;  %v2714_v5 = vpop.f32.mrb[62].mxu0  ;;  %v1262_v6 = vpack.c.bf16 %v1233_v1, %v1232_v0  ;;  %3009 = vmatprep.subr.bf16.mxu1 %v3207_v63 }
 0x441   :  { %v2715_v8 = vpop.f32.mrb[63].mxu0 }
 0x442   :  { %v1126_v9 = vadd.f32 %v2713_v4, %v3798_v17  ;;  %v2716_v13 = vadd.f32 %v2715_v8, %v2714_v5  ;;  %2977 = vmatprep.mubr.bf16.mxu1 %v1262_v6 }
 0x443   :  { %3010 = vmatpush3.bf16.msra.mxu1 %v3207_v63 }
 0x444   :  { %v1129_v38 = vadd.f32 %v2716_v13, %v3798_v17  ;;  %3011 = vmatprep.subr.bf16.mxu1 %v3208_v7  ;;  %v1234_v42 = vmax.f32 %v1126_v9, 0.0 }
 0x446   :  { %v1235_v49 = vmax.f32 %v1129_v38, 0.0  ;;  %v2717_v52 = vpop.f32.mrb[64].mxu0 }
 0x447   :  { %v2718_v11 = vpop.f32.mrb[65].mxu0  ;;  %3012 = vmatpush3.bf16.msra.mxu1 %v3208_v7 }
 0x448   :  { %v1263_v35 = vpack.c.bf16 %v1235_v49, %v1234_v42  ;;  %v2719_v50 = vadd.f32 %v2718_v11, %v2717_v52  ;;  %v2720_v53 = vpop.f32.mrb[66].mxu0  ;;  %3013 = vmatprep.subr.bf16.mxu1 %v3209_v39 }
 0x449   :  { %v2721_v57 = vpop.f32.mrb[67].mxu0 }
 0x44a   :  { %2978 = vmatmul.mubr.bf16.gmra.mrb[84].mxu1 %v1263_v35  ;;  %v1134_v43 = vadd.f32 %v2719_v50, %v3798_v17  ;;  %v2722_v51 = vadd.f32 %v2721_v57, %v2720_v53 }
 0x44b   :  { %3014 = vmatpush3.bf16.msra.mxu1 %v3209_v39 }
 0x44c   :  { %v1137_v54 = vadd.f32 %v2722_v51, %v3798_v17  ;;  %3015 = vmatprep.subr.bf16.mxu1 %v3210_v55  ;;  %v1236_v56 = vmax.f32 %v1134_v43, 0.0 }
 0x44e   :  { %v1237_v10 = vmax.f32 %v1137_v54, 0.0  ;;  %v2723_v12 = vpop.f32.mrb[68].mxu0 }
 0x44f   :  { %v2724_v14 = vpop.f32.mrb[69].mxu0  ;;  %3016 = vmatpush3.bf16.msra.mxu1 %v3210_v55 }
 0x450   :  { %v2725_v15 = vadd.f32 %v2724_v14, %v2723_v12  ;;  %v2726_v16 = vpop.f32.mrb[70].mxu0  ;;  %v1264_v18 = vpack.c.bf16 %v1237_v10, %v1236_v56 }
 0x451   :  { %v2727_v19 = vpop.f32.mrb[71].mxu0 }
 0x452   :  { %v1142_v20 = vadd.f32 %v2725_v15, %v3798_v17  ;;  %v2728_v21 = vadd.f32 %v2727_v19, %v2726_v16  ;;  %2981 = vmatprep.mubr.bf16.mxu1 %v1264_v18 }
 0x454   :  { %v1145_v22 = vadd.f32 %v2728_v21, %v3798_v17  ;;  %v1238_v23 = vmax.f32 %v1142_v20, 0.0 }
 0x456   :  { %v1239_v25 = vmax.f32 %v1145_v22, 0.0  ;;  %v2729_v26 = vpop.f32.mrb[72].mxu0 }
 0x457   :  { %v2730_v27 = vpop.f32.mrb[73].mxu0 }
 0x458   :  { %v1265_v28 = vpack.c.bf16 %v1239_v25, %v1238_v23  ;;  %v2731_v29 = vadd.f32 %v2730_v27, %v2729_v26  ;;  %v2732_v30 = vpop.f32.mrb[74].mxu0 }
 0x459   :  { %v2733_v31 = vpop.f32.mrb[75].mxu0 }
 0x45a   :  { %2982 = vmatmul.mubr.bf16.gmra.mrb[88].mxu1 %v1265_v28  ;;  %v1150_v32 = vadd.f32 %v2731_v29, %v3798_v17  ;;  %v2734_v33 = vadd.f32 %v2733_v31, %v2732_v30 }
 0x45c   :  { %v1153_v34 = vadd.f32 %v2734_v33, %v3798_v17  ;;  %v1240_v36 = vmax.f32 %v1150_v32, 0.0 }
 0x45e   :  { %v1241_v37 = vmax.f32 %v1153_v34, 0.0  ;;  %v2735_v40 = vpop.f32.mrb[76].mxu0 }
 0x45f   :  { %v2736_v41 = vpop.f32.mrb[77].mxu0 }
 0x460   :  { %v2737_v44 = vadd.f32 %v2736_v41, %v2735_v40  ;;  %v2738_v45 = vpop.f32.mrb[78].mxu0  ;;  %v1266_v46 = vpack.c.bf16 %v1241_v37, %v1240_v36 }
 0x461   :  { %v2739_v47 = vpop.f32.mrb[79].mxu0 }
 0x462   :  { %v1158_v48 = vadd.f32 %v2737_v44, %v3798_v17  ;;  %v2740_v24 = vadd.f32 %v2739_v47, %v2738_v45  ;;  %2985 = vmatprep.mubr.bf16.mxu1 %v1266_v46  ;;  %v3211_v46 = vld [vmem:[%s4350_s8 + $0x30] sm:$0xff]  }
 0x463   :  { %3017 = vmatprep.subr.bf16.mxu1 %v3211_v46 }
 0x464   :  { %v1161_v58 = vadd.f32 %v2740_v24, %v3798_v17  ;;  %v1242_v59 = vmax.f32 %v1158_v48, 0.0  ;;  %3018 = vmatpush3.bf16.msra.mxu1 %v3211_v46 }
 0x466   :  { %v1243_v60 = vmax.f32 %v1161_v58, 0.0  ;;  %v2741_v61 = vpop.f32.mrb[80].mxu0 }
 0x467   :  { %v2742_v62 = vpop.f32.mrb[81].mxu0 }
 0x468   :  { %v1267_v63 = vpack.c.bf16 %v1243_v60, %v1242_v59  ;;  %v2743_v0 = vadd.f32 %v2742_v62, %v2741_v61  ;;  %v2744_v1 = vpop.f32.mrb[82].mxu0  ;;  %v3212_v62 = vld [vmem:[%s4350_s8 + $0x38] sm:$0xff]  }
 0x469   :  { %v2745_v2 = vpop.f32.mrb[83].mxu0  ;;  %3019 = vmatprep.subr.bf16.mxu1 %v3212_v62 }
 0x46a   :  { %2986 = vmatmul.mubr.bf16.gmra.mrb[92].mxu1 %v1267_v63  ;;  %v1166_v3 = vadd.f32 %v2743_v0, %v3798_v17  ;;  %v2746_v4 = vadd.f32 %v2745_v2, %v2744_v1 }
 0x46b   :  { %3020 = vmatpush3.bf16.msra.mxu1 %v3212_v62 }
 0x46c   :  { %v1169_v5 = vadd.f32 %v2746_v4, %v3798_v17  ;;  %v1244_v6 = vmax.f32 %v1166_v3, 0.0 }
 0x46e   :  { %v1245_v7 = vmax.f32 %v1169_v5, 0.0  ;;  %v2747_v8 = vpop.f32.mrb[84].mxu0 }
 0x46f   :  { %v2748_v9 = vpop.f32.mrb[85].mxu0 }
 0x470   :  { %v2749_v13 = vadd.f32 %v2748_v9, %v2747_v8  ;;  %v2750_v38 = vpop.f32.mrb[86].mxu0  ;;  %v1268_v39 = vpack.c.bf16 %v1245_v7, %v1244_v6 }
 0x471   :  { %v2751_v42 = vpop.f32.mrb[87].mxu0 }
 0x472   :  { %v1174_v49 = vadd.f32 %v2749_v13, %v3798_v17  ;;  %v2752_v52 = vadd.f32 %v2751_v42, %v2750_v38  ;;  %2989 = vmatprep.mubr.bf16.mxu1 %v1268_v39 }
 0x474   :  { %v1177_v11 = vadd.f32 %v2752_v52, %v3798_v17  ;;  %v1246_v35 = vmax.f32 %v1174_v49, 0.0 }
 0x476   :  { %v1247_v50 = vmax.f32 %v1177_v11, 0.0  ;;  %v2753_v53 = vpop.f32.mrb[88].mxu0 }
 0x477   :  { %v2754_v55 = vpop.f32.mrb[89].mxu0 }
 0x478   :  { %v1269_v57 = vpack.c.bf16 %v1247_v50, %v1246_v35  ;;  %v2755_v43 = vadd.f32 %v2754_v55, %v2753_v53  ;;  %v2756_v51 = vpop.f32.mrb[90].mxu0 }
 0x479   :  { %v2757_v54 = vpop.f32.mrb[91].mxu0 }
 0x47a   :  { %2990 = vmatmul.mubr.bf16.gmra.mrb[96].mxu1 %v1269_v57  ;;  %v1182_v56 = vadd.f32 %v2755_v43, %v3798_v17  ;;  %v2758_v10 = vadd.f32 %v2757_v54, %v2756_v51 }
 0x47c   :  { %v1185_v12 = vadd.f32 %v2758_v10, %v3798_v17  ;;  %v1248_v14 = vmax.f32 %v1182_v56, 0.0  ;;  %v3213_v56 = vld [vmem:[%s4352_s10] sm:$0xff]   ;;  %v3214_v10 = vld [vmem:[%s4352_s10 + $0x8] sm:$0xff]  }
 0x47d   :  { %3053 = vmatprep.subr.bf16.mxu0 %v3213_v56 }
 0x47e   :  { %v1249_v15 = vmax.f32 %v1185_v12, 0.0  ;;  %v2759_v16 = vpop.f32.mrb[92].mxu0  ;;  %v3865_v12 = vld [vmem:[%s4351_s7] ss:$0 sm:$0xff]  ;;  %3054 = vmatpush3.bf16.msra.mxu0 %v3213_v56 }
 0x47f   :  { %v2760_v18 = vpop.f32.mrb[93].mxu0  ;;  %3055 = vmatprep.subr.bf16.mxu0 %v3214_v10 }
 0x480   :  { %v2761_v19 = vadd.f32 %v2760_v18, %v2759_v16  ;;  %v2762_v20 = vpop.f32.mrb[94].mxu0  ;;  %v1270_v21 = vpack.c.bf16 %v1249_v15, %v1248_v14  ;;  %v3215_v14 = vld [vmem:[%s4352_s10 + $0x10] sm:$0xff]  }
 0x481   :  { %v2763_v22 = vpop.f32.mrb[95].mxu0 }
 0x482   :  { %v1190_v23 = vadd.f32 %v2761_v19, %v3798_v17  ;;  %v2764_v25 = vadd.f32 %v2763_v22, %v2762_v20  ;;  %2993 = vmatprep.mubr.bf16.mxu1 %v1270_v21  ;;  %3056 = vmatpush3.bf16.msra.mxu0 %v3214_v10 }
 0x483   :  { %3057 = vmatprep.subr.bf16.mxu0 %v3215_v14 }
 0x484   :  { %v1193_v26 = vadd.f32 %v2764_v25, %v3798_v17  ;;  %v1250_v27 = vmax.f32 %v1190_v23, 0.0  ;;  %v3216_v23 = vld [vmem:[%s4352_s10 + $0x18] sm:$0xff]  }
 0x486   :  { %v1251_v28 = vmax.f32 %v1193_v26, 0.0  ;;  %v2765_v29 = vpop.f32.mrb[96].mxu0  ;;  %3058 = vmatpush3.bf16.msra.mxu0 %v3215_v14 }
 0x487   :  { %v2766_v30 = vpop.f32.mrb[97].mxu0  ;;  %3059 = vmatprep.subr.bf16.mxu0 %v3216_v23 }
 0x488   :  { %v1271_v31 = vpack.c.bf16 %v1251_v28, %v1250_v27  ;;  %v2767_v32 = vadd.f32 %v2766_v30, %v2765_v29  ;;  %v2768_v33 = vpop.f32.mrb[98].mxu0 }
 0x489   :  { %v2769_v34 = vpop.f32.mrb[99].mxu0 }
 0x48a   :  { %2994 = vmatmul.mubr.bf16.gmra.mrb[100].mxu1 %v1271_v31  ;;  %v1198_v36 = vadd.f32 %v2767_v32, %v3798_v17  ;;  %v2770_v37 = vadd.f32 %v2769_v34, %v2768_v33  ;;  %v3217_v31 = vld [vmem:[%s4352_s10 + $0x20] sm:$0xff]   ;;  %3060 = vmatpush3.bf16.msra.mxu0 %v3216_v23  ;;  %v3218_v32 = vld [vmem:[%s4352_s10 + $0x28] sm:$0xff]  }
 0x48b   :  { %3061 = vmatprep.subr.bf16.mxu0 %v3217_v31 }
 0x48c   :  { %v1201_v40 = vadd.f32 %v2770_v37, %v3798_v17  ;;  %v1252_v41 = vmax.f32 %v1198_v36, 0.0 }
 0x48e   :  { %v1253_v44 = vmax.f32 %v1201_v40, 0.0  ;;  %v2771_v45 = vpop.f32.mrb[100].mxu0  ;;  %3062 = vmatpush3.bf16.msra.mxu0 %v3217_v31 }
 0x48f   :  { %v2772_v47 = vpop.f32.mrb[101].mxu0  ;;  %3063 = vmatprep.subr.bf16.mxu0 %v3218_v32 }
 0x490   :  { %v2773_v48 = vadd.f32 %v2772_v47, %v2771_v45  ;;  %v2774_v24 = vpop.f32.mrb[102].mxu0  ;;  %v1272_v58 = vpack.c.bf16 %v1253_v44, %v1252_v41 }
 0x491   :  { %v2775_v59 = vpop.f32.mrb[103].mxu0 }
 0x492   :  { %v1206_v60 = vadd.f32 %v2773_v48, %v3798_v17  ;;  %v2776_v61 = vadd.f32 %v2775_v59, %v2774_v24  ;;  %2997 = vmatprep.mubr.bf16.mxu1 %v1272_v58  ;;  %3064 = vmatpush3.bf16.msra.mxu0 %v3218_v32 }
 0x494   :  { %v1209_v63 = vadd.f32 %v2776_v61, %v3798_v17  ;;  %v1254_v0 = vmax.f32 %v1206_v60, 0.0 }
 0x496   :  { %v1255_v1 = vmax.f32 %v1209_v63, 0.0  ;;  %v2777_v2 = vpop.f32.mrb[104].mxu0 }
 0x497   :  { %v2778_v3 = vpop.f32.mrb[105].mxu0 }
 0x498   :  { %v1273_v4 = vpack.c.bf16 %v1255_v1, %v1254_v0  ;;  %v2779_v5 = vadd.f32 %v2778_v3, %v2777_v2  ;;  %v2780_v6 = vpop.f32.mrb[106].mxu0 }
 0x499   :  { %v2781_v7 = vpop.f32.mrb[107].mxu0 }
 0x49a   :  { %2998 = vmatmul.mubr.bf16.gmra.mrb[104].mxu1 %v1273_v4  ;;  %v1214_v8 = vadd.f32 %v2779_v5, %v3798_v17  ;;  %v2782_v9 = vadd.f32 %v2781_v7, %v2780_v6 }
 0x49c   :  { %v1217_v13 = vadd.f32 %v2782_v9, %v3798_v17  ;;  %v1256_v38 = vmax.f32 %v1214_v8, 0.0 }
 0x49e   :  { %v1257_v39 = vmax.f32 %v1217_v13, 0.0  ;;  %v2783_v42 = vpop.f32.mrb[108].mxu0 }
 0x49f   :  { %v2784_v49 = vpop.f32.mrb[109].mxu0 }
 0x4a0   :  { %v2785_v52 = vadd.f32 %v2784_v49, %v2783_v42  ;;  %v2786_v11 = vpop.f32.mrb[110].mxu0  ;;  %v1274_v35 = vpack.c.bf16 %v1257_v39, %v1256_v38 }
 0x4a1   :  { %v2787_v50 = vpop.f32.mrb[111].mxu0 }
 0x4a2   :  { %v1222_v53 = vadd.f32 %v2785_v52, %v3798_v17  ;;  %v2788_v55 = vadd.f32 %v2787_v50, %v2786_v11  ;;  %3001 = vmatprep.mubr.bf16.mxu1 %v1274_v35 }
 0x4a4   :  { %v1225_v57 = vadd.f32 %v2788_v55, %v3798_v17  ;;  %v1258_v43 = vmax.f32 %v1222_v53, 0.0 }
 0x4a6   :  { %v1259_v51 = vmax.f32 %v1225_v57, 0.0 }
 0x4a8   :  { %v1275_v54 = vpack.c.bf16 %v1259_v51, %v1258_v43 }
 0x4aa   :  { %3002 = vmatmul.mubr.bf16.gmra.mrb[108].mxu1 %v1275_v54 }
 0x50d   :  { %v2975_v17 = vpop.f32.mrb[80].mxu1 }
 0x50e   :  { %v1390_v15 = vadd.f32 %v2975_v17, %v3865_v12  ;;  %v1381_v16 = vpop.f32.mrb[81].mxu1 }
 0x50f   :  { %v1382_v18 = vadd.f32 %v3865_v12, %v1381_v16  ;;  %v2976_v19 = vpop.f32.mrb[82].mxu1 }
 0x510   :  { %v1393_v20 = vadd.f32 %v2976_v19, %v3865_v12  ;;  %v1384_v21 = vpop.f32.mrb[83].mxu1  ;;  %v1510_v25 = vmax.f32 %v1390_v15, 0.0 }
 0x511   :  { %v1385_v22 = vadd.f32 %v3865_v12, %v1384_v21  ;;  %v1508_v27 = vmax.f32 %v1382_v18, 0.0 }
 0x512   :  { %v1511_v26 = vmax.f32 %v1393_v20, 0.0 }
 0x513   :  { %v1509_v28 = vmax.f32 %v1385_v22, 0.0 }
 0x514   :  { %v1541_v29 = vpack.c.bf16 %v1511_v26, %v1510_v25 }
 0x515   :  { %v1540_v30 = vpack.c.bf16 %v1509_v28, %v1508_v27 }
 0x517   :  { %3021 = vmatprep.mubr.bf16.mxu1 %v1540_v30 }
 0x518   :  { %3022 = vmatmul.mubr.bf16.vlgmr.msra.gmra.mrb[112].mxu1 %v1541_v29 }
 0x51d   :  { %v2979_v33 = vpop.f32.mrb[84].mxu1 }
 0x51e   :  { %v1406_v34 = vadd.f32 %v2979_v33, %v3865_v12  ;;  %v1397_v36 = vpop.f32.mrb[85].mxu1 }
 0x51f   :  { %v1398_v37 = vadd.f32 %v3865_v12, %v1397_v36  ;;  %v2980_v40 = vpop.f32.mrb[86].mxu1 }
 0x520   :  { %v1409_v41 = vadd.f32 %v2980_v40, %v3865_v12  ;;  %v1400_v44 = vpop.f32.mrb[87].mxu1  ;;  %v1514_v46 = vmax.f32 %v1406_v34, 0.0 }
 0x521   :  { %v1401_v45 = vadd.f32 %v3865_v12, %v1400_v44  ;;  %v1512_v48 = vmax.f32 %v1398_v37, 0.0 }
 0x522   :  { %v1515_v47 = vmax.f32 %v1409_v41, 0.0 }
 0x523   :  { %v1513_v24 = vmax.f32 %v1401_v45, 0.0  ;;  %v3219_v45 = vld [vmem:[%s4352_s10 + $0x30] sm:$0xff]  }
 0x524   :  { %v1543_v58 = vpack.c.bf16 %v1515_v47, %v1514_v46  ;;  %3065 = vmatprep.subr.bf16.mxu0 %v3219_v45 }
 0x525   :  { %v1542_v59 = vpack.c.bf16 %v1513_v24, %v1512_v48  ;;  %3066 = vmatpush3.bf16.msra.mxu0 %v3219_v45 }
 0x527   :  { %3025 = vmatprep.mubr.bf16.mxu1 %v1542_v59 }
 0x528   :  { %3026 = vmatmul.mubr.bf16.gmra.mrb[116].mxu1 %v1543_v58 }
 0x52d   :  { %v2983_v60 = vpop.f32.mrb[88].mxu1 }
 0x52e   :  { %v1422_v61 = vadd.f32 %v2983_v60, %v3865_v12  ;;  %v1413_v62 = vpop.f32.mrb[89].mxu1 }
 0x52f   :  { %v1414_v63 = vadd.f32 %v3865_v12, %v1413_v62  ;;  %v2984_v0 = vpop.f32.mrb[90].mxu1 }
 0x530   :  { %v1425_v1 = vadd.f32 %v2984_v0, %v3865_v12  ;;  %v1416_v2 = vpop.f32.mrb[91].mxu1  ;;  %v1518_v4 = vmax.f32 %v1422_v61, 0.0  ;;  %v3220_v61 = vld [vmem:[%s4352_s10 + $0x38] sm:$0xff]  }
 0x531   :  { %v1417_v3 = vadd.f32 %v3865_v12, %v1416_v2  ;;  %v1516_v6 = vmax.f32 %v1414_v63, 0.0  ;;  %3067 = vmatprep.subr.bf16.mxu0 %v3220_v61 }
 0x532   :  { %v1519_v5 = vmax.f32 %v1425_v1, 0.0  ;;  %3068 = vmatpush3.bf16.msra.mxu0 %v3220_v61 }
 0x533   :  { %v1517_v7 = vmax.f32 %v1417_v3, 0.0 }
 0x534   :  { %v1545_v8 = vpack.c.bf16 %v1519_v5, %v1518_v4 }
 0x535   :  { %v1544_v9 = vpack.c.bf16 %v1517_v7, %v1516_v6 }
 0x537   :  { %3029 = vmatprep.mubr.bf16.mxu1 %v1544_v9 }
 0x538   :  { %3030 = vmatmul.mubr.bf16.gmra.mrb[120].mxu1 %v1545_v8 }
 0x53d   :  { %v2987_v13 = vpop.f32.mrb[92].mxu1 }
 0x53e   :  { %v1438_v38 = vadd.f32 %v2987_v13, %v3865_v12  ;;  %v1429_v39 = vpop.f32.mrb[93].mxu1 }
 0x53f   :  { %v1430_v42 = vadd.f32 %v3865_v12, %v1429_v39  ;;  %v2988_v49 = vpop.f32.mrb[94].mxu1 }
 0x540   :  { %v1441_v52 = vadd.f32 %v2988_v49, %v3865_v12  ;;  %v1432_v11 = vpop.f32.mrb[95].mxu1  ;;  %v1522_v50 = vmax.f32 %v1438_v38, 0.0 }
 0x541   :  { %v1433_v35 = vadd.f32 %v3865_v12, %v1432_v11  ;;  %v1520_v55 = vmax.f32 %v1430_v42, 0.0 }
 0x542   :  { %v1523_v53 = vmax.f32 %v1441_v52, 0.0 }
 0x543   :  { %v1521_v57 = vmax.f32 %v1433_v35, 0.0 }
 0x544   :  { %v1547_v43 = vpack.c.bf16 %v1523_v53, %v1522_v50  ;;  %v3920_v53 = vld [vmem:[%s4353_s9] ss:$0 sm:$0xff] }
 0x545   :  { %v1546_v51 = vpack.c.bf16 %v1521_v57, %v1520_v55 }
 0x547   :  { %3033 = vmatprep.mubr.bf16.mxu1 %v1546_v51 }
 0x548   :  { %3034 = vmatmul.mubr.bf16.gmra.mrb[124].mxu1 %v1547_v43 }
 0x54d   :  { %v2991_v54 = vpop.f32.mrb[96].mxu1 }
 0x54e   :  { %v1454_v56 = vadd.f32 %v2991_v54, %v3865_v12  ;;  %v1445_v10 = vpop.f32.mrb[97].mxu1 }
 0x54f   :  { %v1446_v17 = vadd.f32 %v3865_v12, %v1445_v10  ;;  %v2992_v14 = vpop.f32.mrb[98].mxu1 }
 0x550   :  { %v1457_v15 = vadd.f32 %v2992_v14, %v3865_v12  ;;  %v1448_v16 = vpop.f32.mrb[99].mxu1  ;;  %v1526_v19 = vmax.f32 %v1454_v56, 0.0 }
 0x551   :  { %v1449_v18 = vadd.f32 %v3865_v12, %v1448_v16  ;;  %v1524_v21 = vmax.f32 %v1446_v17, 0.0 }
 0x552   :  { %v1527_v20 = vmax.f32 %v1457_v15, 0.0 }
 0x553   :  { %v1525_v22 = vmax.f32 %v1449_v18, 0.0 }
 0x554   :  { %v1549_v23 = vpack.c.bf16 %v1527_v20, %v1526_v19 }
 0x555   :  { %v1548_v25 = vpack.c.bf16 %v1525_v22, %v1524_v21 }
 0x557   :  { %3037 = vmatprep.mubr.bf16.mxu1 %v1548_v25 }
 0x558   :  { %3038 = vmatmul.mubr.bf16.gmra.mrb[128].mxu1 %v1549_v23 }
 0x55d   :  { %v2995_v26 = vpop.f32.mrb[100].mxu1 }
 0x55e   :  { %v1470_v27 = vadd.f32 %v2995_v26, %v3865_v12  ;;  %v1461_v28 = vpop.f32.mrb[101].mxu1 }
 0x55f   :  { %v1462_v29 = vadd.f32 %v3865_v12, %v1461_v28  ;;  %v2996_v30 = vpop.f32.mrb[102].mxu1 }
 0x560   :  { %v1473_v31 = vadd.f32 %v2996_v30, %v3865_v12  ;;  %v1464_v32 = vpop.f32.mrb[103].mxu1  ;;  %v1530_v34 = vmax.f32 %v1470_v27, 0.0 }
 0x561   :  { %v1465_v33 = vadd.f32 %v3865_v12, %v1464_v32  ;;  %v1528_v37 = vmax.f32 %v1462_v29, 0.0 }
 0x562   :  { %v1531_v36 = vmax.f32 %v1473_v31, 0.0 }
 0x563   :  { %v1529_v40 = vmax.f32 %v1465_v33, 0.0 }
 0x564   :  { %v1551_v41 = vpack.c.bf16 %v1531_v36, %v1530_v34 }
 0x565   :  { %v1550_v44 = vpack.c.bf16 %v1529_v40, %v1528_v37 }
 0x567   :  { %3041 = vmatprep.mubr.bf16.mxu1 %v1550_v44 }
 0x568   :  { %3042 = vmatmul.mubr.bf16.gmra.mrb[132].mxu1 %v1551_v41 }
 0x56d   :  { %v2999_v46 = vpop.f32.mrb[104].mxu1 }
 0x56e   :  { %v1486_v47 = vadd.f32 %v2999_v46, %v3865_v12  ;;  %v1477_v48 = vpop.f32.mrb[105].mxu1 }
 0x56f   :  { %v1478_v24 = vadd.f32 %v3865_v12, %v1477_v48  ;;  %v3000_v58 = vpop.f32.mrb[106].mxu1 }
 0x570   :  { %v1489_v59 = vadd.f32 %v3000_v58, %v3865_v12  ;;  %v1480_v60 = vpop.f32.mrb[107].mxu1  ;;  %v1534_v63 = vmax.f32 %v1486_v47, 0.0 }
 0x571   :  { %v1481_v62 = vadd.f32 %v3865_v12, %v1480_v60  ;;  %v1532_v1 = vmax.f32 %v1478_v24, 0.0 }
 0x572   :  { %v1535_v0 = vmax.f32 %v1489_v59, 0.0 }
 0x573   :  { %v1533_v2 = vmax.f32 %v1481_v62, 0.0 }
 0x574   :  { %v1553_v3 = vpack.c.bf16 %v1535_v0, %v1534_v63 }
 0x575   :  { %v1552_v4 = vpack.c.bf16 %v1533_v2, %v1532_v1 }
 0x577   :  { %3045 = vmatprep.mubr.bf16.mxu1 %v1552_v4 }
 0x578   :  { %3046 = vmatmul.mubr.bf16.gmra.mrb[136].mxu1 %v1553_v3 }
 0x57d   :  { %v3003_v5 = vpop.f32.mrb[108].mxu1 }
 0x57e   :  { %v1502_v6 = vadd.f32 %v3003_v5, %v3865_v12  ;;  %v1493_v7 = vpop.f32.mrb[109].mxu1 }
 0x57f   :  { %v1494_v8 = vadd.f32 %v3865_v12, %v1493_v7  ;;  %v3004_v9 = vpop.f32.mrb[110].mxu1 }
 0x580   :  { %v1505_v13 = vadd.f32 %v3004_v9, %v3865_v12  ;;  %v1496_v38 = vpop.f32.mrb[111].mxu1  ;;  %v1538_v42 = vmax.f32 %v1502_v6, 0.0 }
 0x581   :  { %v1497_v39 = vadd.f32 %v3865_v12, %v1496_v38  ;;  %v1536_v52 = vmax.f32 %v1494_v8, 0.0 }
 0x582   :  { %v1539_v49 = vmax.f32 %v1505_v13, 0.0 }
 0x583   :  { %v1537_v11 = vmax.f32 %v1497_v39, 0.0 }
 0x584   :  { %v1555_v35 = vpack.c.bf16 %v1539_v49, %v1538_v42 }
 0x585   :  { %v1554_v50 = vpack.c.bf16 %v1537_v11, %v1536_v52 }
 0x587   :  { %3049 = vmatprep.mubr.bf16.mxu1 %v1554_v50 }
 0x588   :  { %3050 = vmatmul.mubr.bf16.gmra.mrb[140].mxu1 %v1555_v35 }
 0x5eb   :  { %v3023_v55 = vpop.f32.mrb[112].mxu1 }
 0x5ec   :  { %v1670_v57 = vadd.f32 %v3023_v55, %v3920_v53  ;;  %v1661_v43 = vpop.f32.mrb[113].mxu1 }
 0x5ed   :  { %v1662_v51 = vadd.f32 %v3920_v53, %v1661_v43  ;;  %v3024_v12 = vpop.f32.mrb[114].mxu1 }
 0x5ee   :  { %v1673_v54 = vadd.f32 %v3024_v12, %v3920_v53  ;;  %v1664_v56 = vpop.f32.mrb[115].mxu1  ;;  %v1790_v17 = vmax.f32 %v1670_v57, 0.0 }
 0x5ef   :  { %v1665_v10 = vadd.f32 %v3920_v53, %v1664_v56  ;;  %v1788_v15 = vmax.f32 %v1662_v51, 0.0 }
 0x5f0   :  { %v1791_v14 = vmax.f32 %v1673_v54, 0.0 }
 0x5f1   :  { %v1789_v16 = vmax.f32 %v1665_v10, 0.0 }
 0x5f2   :  { %v1821_v18 = vpack.c.bf16 %v1791_v14, %v1790_v17 }
 0x5f3   :  { %v1820_v19 = vpack.c.bf16 %v1789_v16, %v1788_v15 }
 0x5f5   :  { %3069 = vmatprep.mubr.bf16.mxu0 %v1820_v19 }
 0x5f6   :  { %3070 = vmatmul.mubr.bf16.vlgmr.msra.gmra.mrb[112].mxu0 %v1821_v18 }
 0x5fb   :  { %v3027_v20 = vpop.f32.mrb[116].mxu1 }
 0x5fc   :  { %v1686_v21 = vadd.f32 %v3027_v20, %v3920_v53  ;;  %v1677_v22 = vpop.f32.mrb[117].mxu1 }
 0x5fd   :  { %v1678_v23 = vadd.f32 %v3920_v53, %v1677_v22  ;;  %v3028_v25 = vpop.f32.mrb[118].mxu1 }
 0x5fe   :  { %v1689_v26 = vadd.f32 %v3028_v25, %v3920_v53  ;;  %v1680_v27 = vpop.f32.mrb[119].mxu1  ;;  %v1794_v29 = vmax.f32 %v1686_v21, 0.0 }
 0x5ff   :  { %v1681_v28 = vadd.f32 %v3920_v53, %v1680_v27  ;;  %v1792_v31 = vmax.f32 %v1678_v23, 0.0 }
 0x600   :  { %v1795_v30 = vmax.f32 %v1689_v26, 0.0 }
 0x601   :  { %v1793_v32 = vmax.f32 %v1681_v28, 0.0 }
 0x602   :  { %v1823_v33 = vpack.c.bf16 %v1795_v30, %v1794_v29 }
 0x603   :  { %v1822_v34 = vpack.c.bf16 %v1793_v32, %v1792_v31 }
 0x605   :  { %3073 = vmatprep.mubr.bf16.mxu0 %v1822_v34 }
 0x606   :  { %3074 = vmatmul.mubr.bf16.gmra.mrb[116].mxu0 %v1823_v33 }
 0x60b   :  { %v3031_v36 = vpop.f32.mrb[120].mxu1 }
 0x60c   :  { %v1702_v37 = vadd.f32 %v3031_v36, %v3920_v53  ;;  %v1693_v40 = vpop.f32.mrb[121].mxu1 }
 0x60d   :  { %v1694_v41 = vadd.f32 %v3920_v53, %v1693_v40  ;;  %v3032_v44 = vpop.f32.mrb[122].mxu1 }
 0x60e   :  { %v1705_v45 = vadd.f32 %v3032_v44, %v3920_v53  ;;  %v1696_v46 = vpop.f32.mrb[123].mxu1  ;;  %v1798_v48 = vmax.f32 %v1702_v37, 0.0 }
 0x60f   :  { %v1697_v47 = vadd.f32 %v3920_v53, %v1696_v46  ;;  %v1796_v58 = vmax.f32 %v1694_v41, 0.0 }
 0x610   :  { %v1799_v24 = vmax.f32 %v1705_v45, 0.0 }
 0x611   :  { %v1797_v59 = vmax.f32 %v1697_v47, 0.0 }
 0x612   :  { %v1825_v60 = vpack.c.bf16 %v1799_v24, %v1798_v48 }
 0x613   :  { %v1824_v61 = vpack.c.bf16 %v1797_v59, %v1796_v58 }
 0x615   :  { %3077 = vmatprep.mubr.bf16.mxu0 %v1824_v61 }
 0x616   :  { %3078 = vmatmul.mubr.bf16.gmra.mrb[120].mxu0 %v1825_v60 }
 0x61b   :  { %v3035_v62 = vpop.f32.mrb[124].mxu1 }
 0x61c   :  { %v1718_v63 = vadd.f32 %v3035_v62, %v3920_v53  ;;  %v1709_v0 = vpop.f32.mrb[125].mxu1 }
 0x61d   :  { %v1710_v1 = vadd.f32 %v3920_v53, %v1709_v0  ;;  %v3036_v2 = vpop.f32.mrb[126].mxu1 }
 0x61e   :  { %v1721_v3 = vadd.f32 %v3036_v2, %v3920_v53  ;;  %v1712_v4 = vpop.f32.mrb[127].mxu1  ;;  %v1802_v6 = vmax.f32 %v1718_v63, 0.0 }
 0x61f   :  { %v1713_v5 = vadd.f32 %v3920_v53, %v1712_v4  ;;  %v1800_v8 = vmax.f32 %v1710_v1, 0.0 }
 0x620   :  { %v1803_v7 = vmax.f32 %v1721_v3, 0.0 }
 0x621   :  { %v1801_v9 = vmax.f32 %v1713_v5, 0.0  ;;  %v3957_v5 = vld [vmem:[%s4354_s11] ss:$0 sm:$0xff] }
 0x622   :  { %v1827_v13 = vpack.c.bf16 %v1803_v7, %v1802_v6 }
 0x623   :  { %v1826_v38 = vpack.c.bf16 %v1801_v9, %v1800_v8 }
 0x625   :  { %3081 = vmatprep.mubr.bf16.mxu0 %v1826_v38 }
 0x626   :  { %3082 = vmatmul.mubr.bf16.gmra.mrb[124].mxu0 %v1827_v13 }
 0x62b   :  { %v3039_v39 = vpop.f32.mrb[128].mxu1 }
 0x62c   :  { %v1734_v42 = vadd.f32 %v3039_v39, %v3920_v53  ;;  %v1725_v49 = vpop.f32.mrb[129].mxu1 }
 0x62d   :  { %v1726_v52 = vadd.f32 %v3920_v53, %v1725_v49  ;;  %v3040_v11 = vpop.f32.mrb[130].mxu1 }
 0x62e   :  { %v1737_v35 = vadd.f32 %v3040_v11, %v3920_v53  ;;  %v1728_v50 = vpop.f32.mrb[131].mxu1  ;;  %v1806_v57 = vmax.f32 %v1734_v42, 0.0 }
 0x62f   :  { %v1729_v55 = vadd.f32 %v3920_v53, %v1728_v50  ;;  %v1804_v51 = vmax.f32 %v1726_v52, 0.0 }
 0x630   :  { %v1807_v43 = vmax.f32 %v1737_v35, 0.0 }
 0x631   :  { %v1805_v12 = vmax.f32 %v1729_v55, 0.0 }
 0x632   :  { %v1829_v54 = vpack.c.bf16 %v1807_v43, %v1806_v57 }
 0x633   :  { %v1828_v56 = vpack.c.bf16 %v1805_v12, %v1804_v51 }
 0x635   :  { %3085 = vmatprep.mubr.bf16.mxu0 %v1828_v56 }
 0x636   :  { %3086 = vmatmul.mubr.bf16.gmra.mrb[128].mxu0 %v1829_v54 }
 0x63b   :  { %v3043_v10 = vpop.f32.mrb[132].mxu1 }
 0x63c   :  { %v1750_v17 = vadd.f32 %v3043_v10, %v3920_v53  ;;  %v1741_v14 = vpop.f32.mrb[133].mxu1 }
 0x63d   :  { %v1742_v15 = vadd.f32 %v3920_v53, %v1741_v14  ;;  %v3044_v16 = vpop.f32.mrb[134].mxu1 }
 0x63e   :  { %v1753_v18 = vadd.f32 %v3044_v16, %v3920_v53  ;;  %v1744_v19 = vpop.f32.mrb[135].mxu1  ;;  %v1810_v21 = vmax.f32 %v1750_v17, 0.0 }
 0x63f   :  { %v1745_v20 = vadd.f32 %v3920_v53, %v1744_v19  ;;  %v1808_v23 = vmax.f32 %v1742_v15, 0.0 }
 0x640   :  { %v1811_v22 = vmax.f32 %v1753_v18, 0.0 }
 0x641   :  { %v1809_v25 = vmax.f32 %v1745_v20, 0.0 }
 0x642   :  { %v1831_v26 = vpack.c.bf16 %v1811_v22, %v1810_v21 }
 0x643   :  { %v1830_v27 = vpack.c.bf16 %v1809_v25, %v1808_v23 }
 0x645   :  { %3089 = vmatprep.mubr.bf16.mxu0 %v1830_v27 }
 0x646   :  { %3090 = vmatmul.mubr.bf16.gmra.mrb[132].mxu0 %v1831_v26 }
 0x64b   :  { %v3047_v28 = vpop.f32.mrb[136].mxu1 }
 0x64c   :  { %v1766_v29 = vadd.f32 %v3047_v28, %v3920_v53  ;;  %v1757_v30 = vpop.f32.mrb[137].mxu1 }
 0x64d   :  { %v1758_v31 = vadd.f32 %v3920_v53, %v1757_v30  ;;  %v3048_v32 = vpop.f32.mrb[138].mxu1 }
 0x64e   :  { %v1769_v33 = vadd.f32 %v3048_v32, %v3920_v53  ;;  %v1760_v34 = vpop.f32.mrb[139].mxu1  ;;  %v1814_v37 = vmax.f32 %v1766_v29, 0.0 }
 0x64f   :  { %v1761_v36 = vadd.f32 %v3920_v53, %v1760_v34  ;;  %v1812_v41 = vmax.f32 %v1758_v31, 0.0 }
 0x650   :  { %v1815_v40 = vmax.f32 %v1769_v33, 0.0 }
 0x651   :  { %v1813_v44 = vmax.f32 %v1761_v36, 0.0 }
 0x652   :  { %v1833_v45 = vpack.c.bf16 %v1815_v40, %v1814_v37 }
 0x653   :  { %v1832_v46 = vpack.c.bf16 %v1813_v44, %v1812_v41 }
 0x655   :  { %3093 = vmatprep.mubr.bf16.mxu0 %v1832_v46 }
 0x656   :  { %3094 = vmatmul.mubr.bf16.gmra.mrb[136].mxu0 %v1833_v45 }
 0x65b   :  { %v3051_v47 = vpop.f32.mrb[140].mxu1 }
 0x65c   :  { %v1782_v48 = vadd.f32 %v3051_v47, %v3920_v53  ;;  %v1773_v24 = vpop.f32.mrb[141].mxu1 }
 0x65d   :  { %v1774_v58 = vadd.f32 %v3920_v53, %v1773_v24  ;;  %v3052_v59 = vpop.f32.mrb[142].mxu1 }
 0x65e   :  { %v1785_v60 = vadd.f32 %v3052_v59, %v3920_v53  ;;  %v1776_v61 = vpop.f32.mrb[143].mxu1  ;;  %v1818_v63 = vmax.f32 %v1782_v48, 0.0 }
 0x65f   :  { %v1777_v62 = vadd.f32 %v3920_v53, %v1776_v61  ;;  %v1816_v1 = vmax.f32 %v1774_v58, 0.0 }
 0x660   :  { %v1819_v0 = vmax.f32 %v1785_v60, 0.0 }
 0x661   :  { %v1817_v2 = vmax.f32 %v1777_v62, 0.0 }
 0x662   :  { %v1835_v3 = vpack.c.bf16 %v1819_v0, %v1818_v63 }
 0x663   :  { %v1834_v4 = vpack.c.bf16 %v1817_v2, %v1816_v1 }
 0x665   :  { %3097 = vmatprep.mubr.bf16.mxu0 %v1834_v4 }
 0x666   :  { %3098 = vmatmul.mubr.bf16.gmra.mrb[140].mxu0 %v1835_v3 }
 0x6c9   :  { %v3071_v6 = vpop.f32.mrb[112].mxu0 }
 0x6ca   :  { %v3960_v7 = vadd.f32 %v3071_v6, %v3957_v5  ;;  %v1941_v8 = vpop.f32.mrb[113].mxu0 }
 0x6cb   :  { %v3963_v53 = vadd.f32 %v3957_v5, %v1941_v8  ;;  %v3072_v9 = vpop.f32.mrb[114].mxu0 }
 0x6cc   :  { %2072 = vmax.xlane.f32.xlu1 %v3960_v7  ;;  %v1944_v13 = vpop.f32.mrb[115].mxu0  ;;  %v3968_v38 = vadd.f32 %v3072_v9, %v3957_v5 }
 0x6cd   :  { %2068 = vmax.xlane.f32.xlu0 %v3963_v53  ;;  %v3971_v39 = vadd.f32 %v3957_v5, %v1944_v13 }
 0x6d0   :  { %2074 = vmax.xlane.f32.xlu1 %v3968_v38 }
 0x6d1   :  { %2070 = vmax.xlane.f32.xlu0 %v3971_v39 }
 0x6d9   :  { %v3075_v42 = vpop.f32.mrb[116].mxu0 }
 0x6da   :  { %v3976_v49 = vadd.f32 %v3075_v42, %v3957_v5  ;;  %v1957_v52 = vpop.f32.mrb[117].mxu0 }
 0x6db   :  { %v3076_v11 = vpop.f32.mrb[118].mxu0  ;;  %v3983_v55 = vadd.f32 %v3957_v5, %v1957_v52 }
 0x6dc   :  { %v3979_v35 = vadd.f32 %v3076_v11, %v3957_v5  ;;  %v1960_v50 = vpop.f32.mrb[119].mxu0  ;;  %2080 = vmax.xlane.f32.xlu0 %v3976_v49 }
 0x6dd   :  { %v3987_v57 = vadd.f32 %v3957_v5, %v1960_v50 }
 0x6de   :  { %2082 = vmax.xlane.f32.xlu1 %v3979_v35 }
 0x6e0   :  { %2076 = vmax.xlane.f32.xlu0 %v3983_v55 }
 0x6e2   :  { %2078 = vmax.xlane.f32.xlu1 %v3987_v57 }
 0x6e9   :  { %v3079_v43 = vpop.f32.mrb[120].mxu0 }
 0x6ea   :  { %v3992_v51 = vadd.f32 %v3079_v43, %v3957_v5  ;;  %v1973_v12 = vpop.f32.mrb[121].mxu0 }
 0x6eb   :  { %v3080_v54 = vpop.f32.mrb[122].mxu0  ;;  %v3999_v17 = vadd.f32 %v3957_v5, %v1973_v12 }
 0x6ec   :  { %v3995_v56 = vadd.f32 %v3080_v54, %v3957_v5  ;;  %v1976_v10 = vpop.f32.mrb[123].mxu0  ;;  %2088 = vmax.xlane.f32.xlu0 %v3992_v51 }
 0x6ed   :  { %v4003_v14 = vadd.f32 %v3957_v5, %v1976_v10 }
 0x6ee   :  { %2090 = vmax.xlane.f32.xlu1 %v3995_v56 }
 0x6f0   :  { %2084 = vmax.xlane.f32.xlu0 %v3999_v17 }
 0x6f2   :  { %2086 = vmax.xlane.f32.xlu1 %v4003_v14 }
 0x6f9   :  { %v3083_v15 = vpop.f32.mrb[124].mxu0 }
 0x6fa   :  { %v4008_v16 = vadd.f32 %v3083_v15, %v3957_v5  ;;  %v1989_v18 = vpop.f32.mrb[125].mxu0 }
 0x6fb   :  { %v3084_v19 = vpop.f32.mrb[126].mxu0  ;;  %v4015_v22 = vadd.f32 %v3957_v5, %v1989_v18 }
 0x6fc   :  { %v4011_v20 = vadd.f32 %v3084_v19, %v3957_v5  ;;  %v1992_v21 = vpop.f32.mrb[127].mxu0  ;;  %2096 = vmax.xlane.f32.xlu0 %v4008_v16 }
 0x6fd   :  { %v4019_v23 = vadd.f32 %v3957_v5, %v1992_v21 }
 0x6fe   :  { %2098 = vmax.xlane.f32.xlu1 %v4011_v20 }
 0x700   :  { %2092 = vmax.xlane.f32.xlu0 %v4015_v22 }
 0x702   :  { %2094 = vmax.xlane.f32.xlu1 %v4019_v23 }
 0x709   :  { %v3087_v25 = vpop.f32.mrb[128].mxu0 }
 0x70a   :  { %v4024_v26 = vadd.f32 %v3087_v25, %v3957_v5  ;;  %v2005_v27 = vpop.f32.mrb[129].mxu0 }
 0x70b   :  { %v3088_v28 = vpop.f32.mrb[130].mxu0  ;;  %v4031_v31 = vadd.f32 %v3957_v5, %v2005_v27 }
 0x70c   :  { %v4027_v29 = vadd.f32 %v3088_v28, %v3957_v5  ;;  %v2008_v30 = vpop.f32.mrb[131].mxu0  ;;  %2104 = vmax.xlane.f32.xlu0 %v4024_v26 }
 0x70d   :  { %v4035_v32 = vadd.f32 %v3957_v5, %v2008_v30 }
 0x70e   :  { %2106 = vmax.xlane.f32.xlu1 %v4027_v29 }
 0x710   :  { %2100 = vmax.xlane.f32.xlu0 %v4031_v31 }
 0x712   :  { %2102 = vmax.xlane.f32.xlu1 %v4035_v32 }
 0x719   :  { %v3091_v33 = vpop.f32.mrb[132].mxu0 }
 0x71a   :  { %v4040_v34 = vadd.f32 %v3091_v33, %v3957_v5  ;;  %v2021_v36 = vpop.f32.mrb[133].mxu0 }
 0x71b   :  { %v3092_v37 = vpop.f32.mrb[134].mxu0  ;;  %v4047_v44 = vadd.f32 %v3957_v5, %v2021_v36 }
 0x71c   :  { %v4043_v40 = vadd.f32 %v3092_v37, %v3957_v5  ;;  %v2024_v41 = vpop.f32.mrb[135].mxu0  ;;  %2112 = vmax.xlane.f32.xlu0 %v4040_v34 }
 0x71d   :  { %v4051_v45 = vadd.f32 %v3957_v5, %v2024_v41 }
 0x71e   :  { %2114 = vmax.xlane.f32.xlu1 %v4043_v40 }
 0x720   :  { %2108 = vmax.xlane.f32.xlu0 %v4047_v44 }
 0x722   :  { %2110 = vmax.xlane.f32.xlu1 %v4051_v45 }
 0x729   :  { %v3095_v46 = vpop.f32.mrb[136].mxu0 }
 0x72a   :  { %v4056_v47 = vadd.f32 %v3095_v46, %v3957_v5  ;;  %v2037_v48 = vpop.f32.mrb[137].mxu0 }
 0x72b   :  { %v3096_v24 = vpop.f32.mrb[138].mxu0  ;;  %v4063_v60 = vadd.f32 %v3957_v5, %v2037_v48 }
 0x72c   :  { %v4059_v58 = vadd.f32 %v3096_v24, %v3957_v5  ;;  %v2040_v59 = vpop.f32.mrb[139].mxu0  ;;  %2120 = vmax.xlane.f32.xlu0 %v4056_v47 }
 0x72d   :  { %v4067_v61 = vadd.f32 %v3957_v5, %v2040_v59 }
 0x72e   :  { %2122 = vmax.xlane.f32.xlu1 %v4059_v58 }
 0x730   :  { %2116 = vmax.xlane.f32.xlu0 %v4063_v60 }
 0x732   :  { %2118 = vmax.xlane.f32.xlu1 %v4067_v61 }
 0x739   :  { %v3099_v62 = vpop.f32.mrb[140].mxu0 }
 0x73a   :  { %v2053_v63 = vpop.f32.mrb[141].mxu0  ;;  %v4079_v4 = vadd.f32 %v3099_v62, %v3957_v5 }
 0x73b   :  { %v4072_v0 = vadd.f32 %v3957_v5, %v2053_v63  ;;  %v3100_v1 = vpop.f32.mrb[142].mxu0 }
 0x73c   :  { %v2056_v2 = vpop.f32.mrb[143].mxu0  ;;  %v4083_v6 = vadd.f32 %v3100_v1, %v3957_v5 }
 0x73d   :  { %v4075_v3 = vadd.f32 %v3957_v5, %v2056_v2  ;;  %2124 = vmax.xlane.f32.xlu0 %v4072_v0 }
 0x73f   :  { %2126 = vmax.xlane.f32.xlu1 %v4075_v3 }
 0x741   :  { %2128 = vmax.xlane.f32.xlu0 %v4079_v4 }
 0x743   :  { %2130 = vmax.xlane.f32.xlu1 %v4083_v6 }
 0x759   :  { %v2073_v8 = vpop.xlane.xlu1 %2072 }
 0x75a   :  { %v4088_v9 = vsub.f32 %v3960_v7, %v2073_v8  ;;  %v2069_v13 = vpop.xlane.xlu0 %2068 }
 0x75b   :  { %v4091_v42 = vsub.f32 %v3963_v53, %v2069_v13 }
 0x75c   :  { %v2168_v52 = vmul.f32 1.442695, %v4088_v9 }
 0x75d   :  { %v2164_v11 = vmul.f32 1.442695, %v4091_v42  ;;  %v2075_v50 = vpop.xlane.xlu1 %2074 }
 0x75e   :  { %3221 = vpow2.f32 %v2168_v52  ;;  %v4096_v5 = vsub.f32 %v3968_v38, %v2075_v50  ;;  %v2071_v43 = vpop.xlane.xlu0 %2070 }
 0x75f   :  { %v4099_v12 = vsub.f32 %v3971_v39, %v2071_v43  ;;  %3223 = vpow2.f32 %v2164_v11 }
 0x760   :  { %v2170_v7 = vmul.f32 1.442695, %v4096_v5 }
 0x761   :  { %v2166_v53 = vmul.f32 1.442695, %v4099_v12 }
 0x762   :  { %3225 = vpow2.f32 %v2170_v7 }
 0x763   :  { %3227 = vpow2.f32 %v2166_v53 }
 0x768   :  { %v3222_v54 = vpop.eup %3221 }
 0x769   :  { %2232 = vadd.xlane.f32.xlu0 %v3222_v54  ;;  %v2081_v10 = vpop.xlane.xlu0 %2080  ;;  %v3224_v18 = vpop.eup %3223 }
 0x76a   :  { %v4104_v15 = vsub.f32 %v3976_v49, %v2081_v10 }
 0x76b   :  { %v2083_v38 = vpop.xlane.xlu1 %2082 }
 0x76c   :  { %v3226_v19 = vpop.eup %3225  ;;  %v2176_v21 = vmul.f32 1.442695, %v4104_v15  ;;  %v4108_v39 = vsub.f32 %v3979_v35, %v2083_v38 }
 0x76d   :  { %2234 = vadd.xlane.f32.xlu1 %v3226_v19  ;;  %2228 = vadd.xlane.f32.xlu0 %v3224_v18  ;;  %v2077_v25 = vpop.xlane.xlu0 %2076  ;;  %v3228_v49 = vpop.eup %3227 }
 0x76e   :  { %3229 = vpow2.f32 %v2176_v21  ;;  %v2178_v27 = vmul.f32 1.442695, %v4108_v39  ;;  %v4112_v28 = vsub.f32 %v3983_v55, %v2077_v25 }
 0x76f   :  { %v2079_v30 = vpop.xlane.xlu1 %2078 }
 0x770   :  { %3231 = vpow2.f32 %v2178_v27  ;;  %v2172_v33 = vmul.f32 1.442695, %v4112_v28  ;;  %v4116_v36 = vsub.f32 %v3987_v57, %v2079_v30 }
 0x771   :  { %2230 = vadd.xlane.f32.xlu1 %v3228_v49 }
 0x772   :  { %3233 = vpow2.f32 %v2172_v33  ;;  %v2174_v35 = vmul.f32 1.442695, %v4116_v36 }
 0x774   :  { %3235 = vpow2.f32 %v2174_v35 }
 0x778   :  { %v3230_v37 = vpop.eup %3229 }
 0x779   :  { %2240 = vadd.xlane.f32.xlu0 %v3230_v37  ;;  %v2089_v41 = vpop.xlane.xlu0 %2088 }
 0x77a   :  { %v3232_v46 = vpop.eup %3231  ;;  %v4120_v55 = vsub.f32 %v3992_v51, %v2089_v41 }
 0x77b   :  { %v2091_v48 = vpop.xlane.xlu1 %2090  ;;  %2242 = vadd.xlane.f32.xlu1 %v3232_v46 }
 0x77c   :  { %v3234_v24 = vpop.eup %3233  ;;  %v2184_v59 = vmul.f32 1.442695, %v4120_v55  ;;  %v4124_v57 = vsub.f32 %v3995_v56, %v2091_v48 }
 0x77d   :  { %2236 = vadd.xlane.f32.xlu0 %v3234_v24  ;;  %v2085_v62 = vpop.xlane.xlu0 %2084 }
 0x77e   :  { %v3236_v63 = vpop.eup %3235  ;;  %3237 = vpow2.f32 %v2184_v59  ;;  %v2186_v1 = vmul.f32 1.442695, %v4124_v57  ;;  %v4128_v2 = vsub.f32 %v3999_v17, %v2085_v62 }
 0x77f   :  { %v2087_v8 = vpop.xlane.xlu1 %2086  ;;  %2238 = vadd.xlane.f32.xlu1 %v3236_v63 }
 0x780   :  { %3239 = vpow2.f32 %v2186_v1  ;;  %v2180_v51 = vmul.f32 1.442695, %v4128_v2  ;;  %v4132_v13 = vsub.f32 %v4003_v14, %v2087_v8 }
 0x782   :  { %3241 = vpow2.f32 %v2180_v51  ;;  %v2182_v56 = vmul.f32 1.442695, %v4132_v13 }
 0x784   :  { %3243 = vpow2.f32 %v2182_v56 }
 0x788   :  { %v3238_v52 = vpop.eup %3237 }
 0x789   :  { %2248 = vadd.xlane.f32.xlu0 %v3238_v52  ;;  %v2097_v11 = vpop.xlane.xlu0 %2096 }
 0x78a   :  { %v3240_v50 = vpop.eup %3239  ;;  %v4136_v43 = vsub.f32 %v4008_v16, %v2097_v11 }
 0x78b   :  { %v2099_v17 = vpop.xlane.xlu1 %2098  ;;  %2250 = vadd.xlane.f32.xlu1 %v3240_v50 }
 0x78c   :  { %v3242_v7 = vpop.eup %3241  ;;  %v2192_v53 = vmul.f32 1.442695, %v4136_v43  ;;  %v4140_v54 = vsub.f32 %v4011_v20, %v2099_v17 }
 0x78d   :  { %2244 = vadd.xlane.f32.xlu0 %v3242_v7  ;;  %v2093_v14 = vpop.xlane.xlu0 %2092 }
 0x78e   :  { %v3244_v10 = vpop.eup %3243  ;;  %3245 = vpow2.f32 %v2192_v53  ;;  %v2194_v18 = vmul.f32 1.442695, %v4140_v54  ;;  %v4144_v38 = vsub.f32 %v4015_v22, %v2093_v14 }
 0x78f   :  { %v2095_v19 = vpop.xlane.xlu1 %2094  ;;  %2246 = vadd.xlane.f32.xlu1 %v3244_v10 }
 0x790   :  { %3247 = vpow2.f32 %v2194_v18  ;;  %v2188_v16 = vmul.f32 1.442695, %v4144_v38  ;;  %v4148_v21 = vsub.f32 %v4019_v23, %v2095_v19 }
 0x792   :  { %3249 = vpow2.f32 %v2188_v16  ;;  %v2190_v20 = vmul.f32 1.442695, %v4148_v21 }
 0x794   :  { %3251 = vpow2.f32 %v2190_v20 }
 0x798   :  { %v3246_v25 = vpop.eup %3245 }
 0x799   :  { %2256 = vadd.xlane.f32.xlu0 %v3246_v25  ;;  %v2105_v27 = vpop.xlane.xlu0 %2104 }
 0x79a   :  { %v3248_v30 = vpop.eup %3247  ;;  %v4152_v49 = vsub.f32 %v4024_v26, %v2105_v27 }
 0x79b   :  { %v2107_v22 = vpop.xlane.xlu1 %2106  ;;  %2258 = vadd.xlane.f32.xlu1 %v3248_v30 }
 0x79c   :  { %v3250_v33 = vpop.eup %3249  ;;  %v2200_v35 = vmul.f32 1.442695, %v4152_v49  ;;  %v4156_v37 = vsub.f32 %v4027_v29, %v2107_v22 }
 0x79d   :  { %2252 = vadd.xlane.f32.xlu0 %v3250_v33  ;;  %v2101_v23 = vpop.xlane.xlu0 %2100 }
 0x79e   :  { %v3252_v41 = vpop.eup %3251  ;;  %3253 = vpow2.f32 %v2200_v35  ;;  %v2202_v46 = vmul.f32 1.442695, %v4156_v37  ;;  %v4160_v48 = vsub.f32 %v4031_v31, %v2101_v23 }
 0x79f   :  { %v2103_v24 = vpop.xlane.xlu1 %2102  ;;  %2254 = vadd.xlane.f32.xlu1 %v3252_v41 }
 0x7a0   :  { %3255 = vpow2.f32 %v2202_v46  ;;  %v2196_v26 = vmul.f32 1.442695, %v4160_v48  ;;  %v4164_v59 = vsub.f32 %v4035_v32, %v2103_v24 }
 0x7a2   :  { %3257 = vpow2.f32 %v2196_v26  ;;  %v2198_v29 = vmul.f32 1.442695, %v4164_v59 }
 0x7a4   :  { %3259 = vpow2.f32 %v2198_v29 }
 0x7a8   :  { %v3254_v62 = vpop.eup %3253 }
 0x7a9   :  { %2264 = vadd.xlane.f32.xlu0 %v3254_v62  ;;  %v2113_v63 = vpop.xlane.xlu0 %2112 }
 0x7aa   :  { %v3256_v1 = vpop.eup %3255  ;;  %v4168_v8 = vsub.f32 %v4040_v34, %v2113_v63 }
 0x7ab   :  { %v2115_v31 = vpop.xlane.xlu1 %2114  ;;  %2266 = vadd.xlane.f32.xlu1 %v3256_v1 }
 0x7ac   :  { %v3258_v51 = vpop.eup %3257  ;;  %v2208_v56 = vmul.f32 1.442695, %v4168_v8  ;;  %v4172_v52 = vsub.f32 %v4043_v40, %v2115_v31 }
 0x7ad   :  { %2260 = vadd.xlane.f32.xlu0 %v3258_v51  ;;  %v2109_v32 = vpop.xlane.xlu0 %2108 }
 0x7ae   :  { %v3260_v11 = vpop.eup %3259  ;;  %3261 = vpow2.f32 %v2208_v56  ;;  %v2210_v50 = vmul.f32 1.442695, %v4172_v52  ;;  %v4176_v17 = vsub.f32 %v4047_v44, %v2109_v32 }
 0x7af   :  { %v2111_v7 = vpop.xlane.xlu1 %2110  ;;  %2262 = vadd.xlane.f32.xlu1 %v3260_v11 }
 0x7b0   :  { %3263 = vpow2.f32 %v2210_v50  ;;  %v2204_v34 = vmul.f32 1.442695, %v4176_v17  ;;  %v4180_v53 = vsub.f32 %v4051_v45, %v2111_v7 }
 0x7b2   :  { %3265 = vpow2.f32 %v2204_v34  ;;  %v2206_v40 = vmul.f32 1.442695, %v4180_v53 }
 0x7b4   :  { %3267 = vpow2.f32 %v2206_v40 }
 0x7b8   :  { %v3262_v14 = vpop.eup %3261 }
 0x7b9   :  { %2272 = vadd.xlane.f32.xlu0 %v3262_v14  ;;  %v2121_v10 = vpop.xlane.xlu0 %2120 }
 0x7ba   :  { %v3264_v18 = vpop.eup %3263  ;;  %v4184_v19 = vsub.f32 %v4056_v47, %v2121_v10 }
 0x7bb   :  { %v2123_v44 = vpop.xlane.xlu1 %2122  ;;  %2274 = vadd.xlane.f32.xlu1 %v3264_v18 }
 0x7bc   :  { %v3266_v16 = vpop.eup %3265  ;;  %v2216_v20 = vmul.f32 1.442695, %v4184_v19  ;;  %v4188_v25 = vsub.f32 %v4059_v58, %v2123_v44 }
 0x7bd   :  { %2268 = vadd.xlane.f32.xlu0 %v3266_v16  ;;  %v2117_v45 = vpop.xlane.xlu0 %2116 }
 0x7be   :  { %v3268_v27 = vpop.eup %3267  ;;  %3269 = vpow2.f32 %v2216_v20  ;;  %v2218_v30 = vmul.f32 1.442695, %v4188_v25  ;;  %v4192_v22 = vsub.f32 %v4063_v60, %v2117_v45 }
 0x7bf   :  { %v2119_v33 = vpop.xlane.xlu1 %2118  ;;  %2270 = vadd.xlane.f32.xlu1 %v3268_v27 }
 0x7c0   :  { %3271 = vpow2.f32 %v2218_v30  ;;  %v2212_v47 = vmul.f32 1.442695, %v4192_v22  ;;  %v4196_v35 = vsub.f32 %v4067_v61, %v2119_v33 }
 0x7c2   :  { %3273 = vpow2.f32 %v2212_v47  ;;  %v2214_v58 = vmul.f32 1.442695, %v4196_v35 }
 0x7c4   :  { %3275 = vpow2.f32 %v2214_v58 }
 0x7c8   :  { %v3270_v23 = vpop.eup %3269 }
 0x7c9   :  { %2280 = vadd.xlane.f32.xlu0 %v3270_v23 }
 0x7ca   :  { %v3272_v41 = vpop.eup %3271  ;;  %v2125_v46 = vpop.xlane.xlu0 %2124 }
 0x7cb   :  { %v4200_v24 = vsub.f32 %v4072_v0, %v2125_v46  ;;  %2282 = vadd.xlane.f32.xlu1 %v3272_v41 }
 0x7cc   :  { %v3274_v60 = vpop.eup %3273  ;;  %v2127_v26 = vpop.xlane.xlu1 %2126 }
 0x7cd   :  { %v2220_v29 = vmul.f32 1.442695, %v4200_v24  ;;  %v4204_v62 = vsub.f32 %v4075_v3, %v2127_v26  ;;  %2276 = vadd.xlane.f32.xlu0 %v3274_v60 }
 0x7ce   :  { %v3276_v61 = vpop.eup %3275  ;;  %v2129_v63 = vpop.xlane.xlu0 %2128 }
 0x7cf   :  { %3277 = vpow2.f32 %v2220_v29  ;;  %v2222_v1 = vmul.f32 1.442695, %v4204_v62  ;;  %v4208_v31 = vsub.f32 %v4079_v4, %v2129_v63  ;;  %2278 = vadd.xlane.f32.xlu1 %v3276_v61 }
 0x7d0   :  { %v2131_v0 = vpop.xlane.xlu1 %2130 }
 0x7d1   :  { %3279 = vpow2.f32 %v2222_v1  ;;  %v2224_v51 = vmul.f32 1.442695, %v4208_v31  ;;  %v4212_v56 = vsub.f32 %v4083_v6, %v2131_v0 }
 0x7d3   :  { %3281 = vpow2.f32 %v2224_v51  ;;  %v2226_v3 = vmul.f32 1.442695, %v4212_v56 }
 0x7d5   :  { %3283 = vpow2.f32 %v2226_v3 }
 0x7d9   :  { %v3278_v32 = vpop.eup %3277 }
 0x7da   :  { %2284 = vadd.xlane.f32.xlu0 %v3278_v32 }
 0x7db   :  { %v3280_v11 = vpop.eup %3279 }
 0x7dc   :  { %2286 = vadd.xlane.f32.xlu1 %v3280_v11 }
 0x7dd   :  { %v3282_v50 = vpop.eup %3281 }
 0x7de   :  { %2288 = vadd.xlane.f32.xlu0 %v3282_v50 }
 0x7df   :  { %v3284_v4 = vpop.eup %3283 }
 0x7e0   :  { %2290 = vadd.xlane.f32.xlu1 %v3284_v4 }
 0x7f6   :  { %v2233_v7 = vpop.xlane.xlu0 %2232 }
 0x7f7   :  { %3285 = vlog2.f32 %v2233_v7 }
 0x7fa   :  { %v2235_v34 = vpop.xlane.xlu1 %2234  ;;  %v2229_v40 = vpop.xlane.xlu0 %2228 }
 0x7fb   :  { %3287 = vlog2.f32 %v2235_v34 }
 0x7fc   :  { %3289 = vlog2.f32 %v2229_v40 }
 0x7fe   :  { %v2231_v6 = vpop.xlane.xlu1 %2230 }
 0x7ff   :  { %3291 = vlog2.f32 %v2231_v6 }
 0x801   :  { %v3286_v14 = vpop.eup %3285 }
 0x802   :  { %v2297_v10 = vmul.f32 0.6931472, %v3286_v14 }
 0x804   :  { %v2358_v18 = vsub.f32 %v4088_v9, %v2297_v10 }
 0x805   :  { %v3288_v44 = vpop.eup %3287 }
 0x806   :  { %v3290_v16 = vpop.eup %3289  ;;  %2390 = vst [vmem:[%s4355_s12 + $0x10] sm:$0xff] %v2358_v18  ;;  %v2299_v20 = vmul.f32 0.6931472, %v3288_v44  ;;  %v2241_v45 = vpop.xlane.xlu0 %2240 }
 0x807   :  { %v2293_v27 = vmul.f32 0.6931472, %v3290_v16  ;;  %3293 = vlog2.f32 %v2241_v45 }
 0x808   :  { %v2359_v30 = vsub.f32 %v4096_v5, %v2299_v20  ;;  %v2243_v33 = vpop.xlane.xlu1 %2242 }
 0x809   :  { %v3292_v47 = vpop.eup %3291  ;;  %v2356_v58 = vsub.f32 %v4091_v42, %v2293_v27  ;;  %3295 = vlog2.f32 %v2243_v33 }
 0x80a   :  { %2391 = vst [vmem:[%s4355_s12 + $0x18] sm:$0xff] %v2359_v30  ;;  %v2295_v9 = vmul.f32 0.6931472, %v3292_v47  ;;  %v2237_v23 = vpop.xlane.xlu0 %2236 }
 0x80b   :  { %2388 = vst [vmem:[%s4355_s12] sm:$0xff] %v2356_v58  ;;  %3297 = vlog2.f32 %v2237_v23 }
 0x80c   :  { %v2357_v41 = vsub.f32 %v4099_v12, %v2295_v9  ;;  %v2239_v46 = vpop.xlane.xlu1 %2238 }
 0x80d   :  { %3299 = vlog2.f32 %v2239_v46 }
 0x80e   :  { %2389 = vst [vmem:[%s4355_s12 + $0x8] sm:$0xff] %v2357_v41 }
 0x811   :  { %v3294_v42 = vpop.eup %3293 }
 0x812   :  { %v2305_v5 = vmul.f32 0.6931472, %v3294_v42 }
 0x813   :  { %v3296_v60 = vpop.eup %3295 }
 0x814   :  { %v2362_v26 = vsub.f32 %v4104_v15, %v2305_v5  ;;  %v2307_v29 = vmul.f32 0.6931472, %v3296_v60 }
 0x815   :  { %v3298_v61 = vpop.eup %3297 }
 0x816   :  { %2394 = vst [vmem:[%s4355_s12 + $0x30] sm:$0xff] %v2362_v26  ;;  %v2363_v63 = vsub.f32 %v4108_v39, %v2307_v29  ;;  %v2301_v12 = vmul.f32 0.6931472, %v3298_v61  ;;  %v2249_v1 = vpop.xlane.xlu0 %2248 }
 0x817   :  { %v3300_v0 = vpop.eup %3299  ;;  %3301 = vlog2.f32 %v2249_v1 }
 0x818   :  { %2395 = vst [vmem:[%s4355_s12 + $0x38] sm:$0xff] %v2363_v63  ;;  %v2360_v51 = vsub.f32 %v4112_v28, %v2301_v12  ;;  %v2303_v3 = vmul.f32 0.6931472, %v3300_v0  ;;  %v2251_v15 = vpop.xlane.xlu1 %2250 }
 0x819   :  { %3303 = vlog2.f32 %v2251_v15 }
 0x81a   :  { %2392 = vst [vmem:[%s4355_s12 + $0x20] sm:$0xff] %v2360_v51  ;;  %v2361_v32 = vsub.f32 %v4116_v36, %v2303_v3  ;;  %v2245_v39 = vpop.xlane.xlu0 %2244 }
 0x81b   :  { %3305 = vlog2.f32 %v2245_v39 }
 0x81c   :  { %2393 = vst [vmem:[%s4355_s12 + $0x28] sm:$0xff] %v2361_v32  ;;  %v2247_v11 = vpop.xlane.xlu1 %2246 }
 0x81d   :  { %3307 = vlog2.f32 %v2247_v11 }
 0x821   :  { %v3302_v50 = vpop.eup %3301 }
 0x822   :  { %v2313_v4 = vmul.f32 0.6931472, %v3302_v50 }
 0x823   :  { %v3304_v28 = vpop.eup %3303 }
 0x824   :  { %v2366_v7 = vsub.f32 %v4120_v55, %v2313_v4  ;;  %v2315_v34 = vmul.f32 0.6931472, %v3304_v28 }
 0x825   :  { %v3306_v40 = vpop.eup %3305 }
 0x826   :  { %2398 = vst [vmem:[%s4355_s12 + $0x50] sm:$0xff] %v2366_v7  ;;  %v2367_v36 = vsub.f32 %v4124_v57, %v2315_v34  ;;  %v2309_v6 = vmul.f32 0.6931472, %v3306_v40  ;;  %v2257_v14 = vpop.xlane.xlu0 %2256 }
 0x827   :  { %v3308_v10 = vpop.eup %3307  ;;  %3309 = vlog2.f32 %v2257_v14 }
 0x828   :  { %2399 = vst [vmem:[%s4355_s12 + $0x58] sm:$0xff] %v2367_v36  ;;  %v2364_v18 = vsub.f32 %v4128_v2, %v2309_v6  ;;  %v2311_v44 = vmul.f32 0.6931472, %v3308_v10  ;;  %v2259_v55 = vpop.xlane.xlu1 %2258 }
 0x829   :  { %3311 = vlog2.f32 %v2259_v55 }
 0x82a   :  { %2396 = vst [vmem:[%s4355_s12 + $0x40] sm:$0xff] %v2364_v18  ;;  %v2365_v16 = vsub.f32 %v4132_v13, %v2311_v44  ;;  %v2253_v57 = vpop.xlane.xlu0 %2252 }
 0x82b   :  { %3313 = vlog2.f32 %v2253_v57 }
 0x82c   :  { %2397 = vst [vmem:[%s4355_s12 + $0x48] sm:$0xff] %v2365_v16  ;;  %v2255_v20 = vpop.xlane.xlu1 %2254 }
 0x82d   :  { %3315 = vlog2.f32 %v2255_v20 }
 0x831   :  { %v3310_v45 = vpop.eup %3309 }
 0x832   :  { %v2321_v27 = vmul.f32 0.6931472, %v3310_v45 }
 0x833   :  { %v3312_v2 = vpop.eup %3311 }
 0x834   :  { %v2370_v30 = vsub.f32 %v4136_v43, %v2321_v27  ;;  %v2323_v33 = vmul.f32 0.6931472, %v3312_v2 }
 0x835   :  { %v3314_v47 = vpop.eup %3313 }
 0x836   :  { %2402 = vst [vmem:[%s4355_s12 + $0x70] sm:$0xff] %v2370_v30  ;;  %v2371_v13 = vsub.f32 %v4140_v54, %v2323_v33  ;;  %v2317_v58 = vmul.f32 0.6931472, %v3314_v47  ;;  %v2265_v9 = vpop.xlane.xlu0 %2264 }
 0x837   :  { %v3316_v23 = vpop.eup %3315  ;;  %3317 = vlog2.f32 %v2265_v9 }
 0x838   :  { %2403 = vst [vmem:[%s4355_s12 + $0x78] sm:$0xff] %v2371_v13  ;;  %v2368_v41 = vsub.f32 %v4144_v38, %v2317_v58  ;;  %v2319_v46 = vmul.f32 0.6931472, %v3316_v23  ;;  %v2267_v43 = vpop.xlane.xlu1 %2266 }
 0x839   :  { %3319 = vlog2.f32 %v2267_v43 }
 0x83a   :  { %2400 = vst [vmem:[%s4355_s12 + $0x60] sm:$0xff] %v2368_v41  ;;  %v2369_v42 = vsub.f32 %v4148_v21, %v2319_v46  ;;  %v2261_v54 = vpop.xlane.xlu0 %2260 }
 0x83b   :  { %3321 = vlog2.f32 %v2261_v54 }
 0x83c   :  { %2401 = vst [vmem:[%s4355_s12 + $0x68] sm:$0xff] %v2369_v42  ;;  %v2263_v5 = vpop.xlane.xlu1 %2262 }
 0x83d   :  { %3323 = vlog2.f32 %v2263_v5 }
 0x841   :  { %v3318_v60 = vpop.eup %3317 }
 0x842   :  { %v2329_v26 = vmul.f32 0.6931472, %v3318_v60 }
 0x843   :  { %v3320_v38 = vpop.eup %3319 }
 0x844   :  { %v2374_v29 = vsub.f32 %v4152_v49, %v2329_v26  ;;  %v2331_v61 = vmul.f32 0.6931472, %v3320_v38 }
 0x845   :  { %v3322_v63 = vpop.eup %3321 }
 0x846   :  { %2406 = vst [vmem:[%s4355_s12 + $0x90] sm:$0xff] %v2374_v29  ;;  %v2375_v21 = vsub.f32 %v4156_v37, %v2331_v61  ;;  %v2325_v12 = vmul.f32 0.6931472, %v3322_v63  ;;  %v2273_v1 = vpop.xlane.xlu0 %2272 }
 0x847   :  { %v3324_v0 = vpop.eup %3323  ;;  %3325 = vlog2.f32 %v2273_v1 }
 0x848   :  { %2407 = vst [vmem:[%s4355_s12 + $0x98] sm:$0xff] %v2375_v21  ;;  %v2372_v51 = vsub.f32 %v4160_v48, %v2325_v12  ;;  %v2327_v3 = vmul.f32 0.6931472, %v3324_v0  ;;  %v2275_v49 = vpop.xlane.xlu1 %2274 }
 0x849   :  { %3327 = vlog2.f32 %v2275_v49 }
 0x84a   :  { %2404 = vst [vmem:[%s4355_s12 + $0x80] sm:$0xff] %v2372_v51  ;;  %v2373_v15 = vsub.f32 %v4164_v59, %v2327_v3  ;;  %v2269_v37 = vpop.xlane.xlu0 %2268 }
 0x84b   :  { %3329 = vlog2.f32 %v2269_v37 }
 0x84c   :  { %2405 = vst [vmem:[%s4355_s12 + $0x88] sm:$0xff] %v2373_v15  ;;  %v2271_v32 = vpop.xlane.xlu1 %2270 }
 0x84d   :  { %3331 = vlog2.f32 %v2271_v32 }
 0x851   :  { %v3326_v39 = vpop.eup %3325 }
 0x852   :  { %v2337_v11 = vmul.f32 0.6931472, %v3326_v39 }
 0x853   :  { %v3328_v48 = vpop.eup %3327 }
 0x854   :  { %v2378_v50 = vsub.f32 %v4168_v8, %v2337_v11  ;;  %v2339_v4 = vmul.f32 0.6931472, %v3328_v48 }
 0x855   :  { %v3330_v28 = vpop.eup %3329 }
 0x856   :  { %2410 = vst [vmem:[%s4355_s12 + $0xb0] sm:$0xff] %v2378_v50  ;;  %v2379_v59 = vsub.f32 %v4172_v52, %v2339_v4  ;;  %v2333_v7 = vmul.f32 0.6931472, %v3330_v28  ;;  %v2281_v34 = vpop.xlane.xlu0 %2280 }
 0x857   :  { %v3332_v40 = vpop.eup %3331  ;;  %3333 = vlog2.f32 %v2281_v34 }
 0x858   :  { %2411 = vst [vmem:[%s4355_s12 + $0xb8] sm:$0xff] %v2379_v59  ;;  %v2376_v36 = vsub.f32 %v4176_v17, %v2333_v7  ;;  %v2335_v6 = vmul.f32 0.6931472, %v3332_v40  ;;  %v2283_v8 = vpop.xlane.xlu1 %2282 }
 0x859   :  { %3335 = vlog2.f32 %v2283_v8 }
 0x85a   :  { %2408 = vst [vmem:[%s4355_s12 + $0xa0] sm:$0xff] %v2376_v36  ;;  %v2377_v14 = vsub.f32 %v4180_v53, %v2335_v6  ;;  %v2277_v52 = vpop.xlane.xlu0 %2276 }
 0x85b   :  { %3337 = vlog2.f32 %v2277_v52 }
 0x85c   :  { %2409 = vst [vmem:[%s4355_s12 + $0xa8] sm:$0xff] %v2377_v14  ;;  %v2279_v10 = vpop.xlane.xlu1 %2278 }
 0x85d   :  { %3339 = vlog2.f32 %v2279_v10 }
 0x861   :  { %v3334_v18 = vpop.eup %3333 }
 0x862   :  { %v2345_v44 = vmul.f32 0.6931472, %v3334_v18 }
 0x863   :  { %v3336_v17 = vpop.eup %3335 }
 0x864   :  { %v2382_v55 = vsub.f32 %v4184_v19, %v2345_v44  ;;  %v2347_v16 = vmul.f32 0.6931472, %v3336_v17 }
 0x865   :  { %v3338_v57 = vpop.eup %3337 }
 0x866   :  { %2414 = vst [vmem:[%s4355_s12 + $0xd0] sm:$0xff] %v2382_v55  ;;  %v2383_v53 = vsub.f32 %v4188_v25, %v2347_v16  ;;  %v2341_v20 = vmul.f32 0.6931472, %v3338_v57 }
 0x867   :  { %v3340_v45 = vpop.eup %3339  ;;  %v2285_v27 = vpop.xlane.xlu0 %2284 }
 0x868   :  { %2415 = vst [vmem:[%s4355_s12 + $0xd8] sm:$0xff] %v2383_v53  ;;  %v2380_v2 = vsub.f32 %v4192_v22, %v2341_v20  ;;  %v2343_v30 = vmul.f32 0.6931472, %v3340_v45  ;;  %3341 = vlog2.f32 %v2285_v27 }
 0x869   :  { %v2287_v19 = vpop.xlane.xlu1 %2286 }
 0x86a   :  { %2412 = vst [vmem:[%s4355_s12 + $0xc0] sm:$0xff] %v2380_v2  ;;  %v2381_v33 = vsub.f32 %v4196_v35, %v2343_v30  ;;  %3343 = vlog2.f32 %v2287_v19 }
 0x86b   :  { %v2289_v25 = vpop.xlane.xlu0 %2288 }
 0x86c   :  { %2413 = vst [vmem:[%s4355_s12 + $0xc8] sm:$0xff] %v2381_v33  ;;  %3345 = vlog2.f32 %v2289_v25 }
 0x86d   :  { %v2291_v47 = vpop.xlane.xlu1 %2290 }
 0x86e   :  { %3347 = vlog2.f32 %v2291_v47 }
 0x872   :  { %v3342_v13 = vpop.eup %3341 }
 0x873   :  { %v2349_v22 = vmul.f32 0.6931472, %v3342_v13 }
 0x874   :  { %v3344_v58 = vpop.eup %3343 }
 0x875   :  { %v2384_v9 = vsub.f32 %v4200_v24, %v2349_v22  ;;  %v2351_v23 = vmul.f32 0.6931472, %v3344_v58 }
 0x876   :  { %v3346_v41 = vpop.eup %3345 }
 0x877   :  { %2416 = vst [vmem:[%s4355_s12 + $0xe0] sm:$0xff] %v2384_v9  ;;  %v2385_v35 = vsub.f32 %v4204_v62, %v2351_v23  ;;  %v2353_v46 = vmul.f32 0.6931472, %v3346_v41 }
 0x878   :  { %v3348_v43 = vpop.eup %3347 }
 0x879   :  { %2417 = vst [vmem:[%s4355_s12 + $0xe8] sm:$0xff] %v2385_v35  ;;  %v2386_v42 = vsub.f32 %v4208_v31, %v2353_v46  ;;  %v2355_v54 = vmul.f32 0.6931472, %v3348_v43 }
 0x87b   :  { %2418 = vst [vmem:[%s4355_s12 + $0xf0] sm:$0xff] %v2386_v42  ;;  %v2387_v24 = vsub.f32 %v4212_v56, %v2355_v54 }
 0x87d   :  { %2419 = vst [vmem:[%s4355_s12 + $0xf8] sm:$0xff] %v2387_v24 }

</bundles_post_ra>
